<compile_context>
chip_gen: v7x
topology: tpu7x:2x2x1
jax: 0.10.0
libtpu: 0.0.40
codegen_flags: <defaults>
</compile_context>

<pallas_src>
import functools

import jax
import jax.numpy as jnp
from jax.experimental import pallas as pl
from jax.experimental.pallas import tpu as pltpu

VMEM_SPEC = pl.BlockSpec(memory_space=pltpu.MemorySpace.VMEM)
OUT_PAD = 128   # lane-dense padded output width (true output is 6 columns)


# ---------------------------------------------------------------------------
# Fused kernel: stacked LSTM -> static MLP -> concat -> fc head -> probs
# ---------------------------------------------------------------------------
def _fused_kernel(is_deltas,
                  x_ref, w_ih_ref, w_hh_ref, b_ref,
                  xs_ref,
                  ws1_ref, bs1_ref, ws2_ref, bs2_ref, ws3_ref, bs3_ref,
                  wf1h_ref, wf1s_ref, bf1_ref,
                  gamma_ref, beta_ref, mean_ref, var_ref,
                  wf2_ref, bf2_ref,
                  out_ref):
    """x_ref:    (T*B, H)   t-major rows, features zero-padded to H
       w_ih_ref: (L, H, 4H) input->gate weights (layer 0 zero-row-padded)
       w_hh_ref: (L, H, 4H) hidden->gate weights
       b_ref:    (L, 1, 4H) b_ih + b_hh
       xs_ref:   (B, S)     static features
       out_ref:  (B, 128)   lane-dense padded output (cols 0..5 are the result)
    """
    f32 = jnp.float32
    B = xs_ref.shape[0]
    TB, H = x_ref.shape
    T = TB // B
    L = w_ih_ref.shape[0]
    G = 4 * H

    # ---- stacked LSTM (inference: no dropout) -----------------------------
    # t-major sequence kept in registers; only h @ w_hh sits on the serial chain.
    seq = x_ref[...].astype(f32)                                  # (T*B, H)
    gate_col = jax.lax.broadcasted_iota(jnp.int32, (B, G), 1)
    is_g = (gate_col >= 2 * H) & (gate_col < 3 * H)               # tanh gate block

    h = jnp.zeros((B, H), f32)
    for l in range(L):                      # layers: sequential, unrolled (small L)
        w_hh = w_hh_ref[l]                                        # (H, 4H)
        # whole-sequence input projection, bias folded in (off the serial chain)
        xproj = jnp.dot(seq, w_ih_ref[l],
                        preferred_element_type=f32) + b_ref[l]    # (T*B, 4H)
        h = jnp.zeros((B, H), f32)
        c = jnp.zeros((B, H), f32)
        hs = []
        for t in range(T):                  # time: sequential, unrolled (small T)
            gates = xproj[t * B:(t + 1) * B, :] + jnp.dot(
                h, w_hh, preferred_element_type=f32)              # (B, 4H)
            act = jnp.where(is_g, jnp.tanh(gates), jax.nn.sigmoid(gates))
            i_g = act[:, 0 * H:1 * H]
            f_g = act[:, 1 * H:2 * H]
            g_g = act[:, 2 * H:3 * H]
            o_g = act[:, 3 * H:4 * H]
            c = f_g * c + i_g * g_g
            h = o_g * jnp.tanh(c)
            if l < L - 1:
                hs.append(h)
        if l < L - 1:
            seq = jnp.concatenate(hs, axis=0)                     # (T*B, H), t-major

    # ---- static MLP: Linear -> ReLU -> Linear -> ReLU -> Linear -----------
    s = xs_ref[...].astype(f32)
    s = jnp.maximum(jnp.dot(s, ws1_ref[...], preferred_element_type=f32)
                    + bs1_ref[...], 0.0)
    s = jnp.maximum(jnp.dot(s, ws2_ref[...], preferred_element_type=f32)
                    + bs2_ref[...], 0.0)
    s = jnp.dot(s, ws3_ref[...], preferred_element_type=f32) + bs3_ref[...]

    # ---- fc head: Linear(concat) -> ReLU -> BatchNorm(eval) -> Linear -----
    # concat([h, s]) @ W == h @ W[:H] + s @ W[H:]
    z = (jnp.dot(h, wf1h_ref[...], preferred_element_type=f32)
         + jnp.dot(s, wf1s_ref[...], preferred_element_type=f32)
         + bf1_ref[...])
    z = jnp.maximum(z, 0.0)
    inv = jax.lax.rsqrt(var_ref[...] + 1e-5)
    z = (z - mean_ref[...]) * (inv * gamma_ref[...]) + beta_ref[...]
    logits = jnp.dot(z, wf2_ref[...], preferred_element_type=f32) + bf2_ref[...]

    if is_deltas:
        out_ref[...] = logits
    else:
        sig = jax.nn.sigmoid(logits)
        col = jax.lax.broadcasted_iota(jnp.int32, sig.shape, 1)
        stu = col < 3
        adu = (col >= 3) & (col < 6)
        stu_sum = jnp.sum(jnp.where(stu, sig, 0.0), axis=1, keepdims=True)
        adu_sum = jnp.sum(jnp.where(adu, sig, 0.0), axis=1, keepdims=True)
        denom = jnp.where(stu, stu_sum, adu_sum)
        out_ref[...] = sig / denom          # padded cols sliced away in wrapper


def fused_forward(x_tb, x_static, p, is_deltas):
    B = x_static.shape[0]
    kern = functools.partial(_fused_kernel, is_deltas)
    args = (x_tb, p['w_ih'], p['w_hh'], p['b'],
            x_static,
            p['ws1'], p['bs1'], p['ws2'], p['bs2'], p['ws3'], p['bs3'],
            p['wf1_h'], p['wf1_s'], p['bf1'],
            p['gamma'], p['beta'], p['mean'], p['var'],
            p['wf2'], p['bf2'])
    out = pl.pallas_call(
        kern,
        out_shape=jax.ShapeDtypeStruct((B, OUT_PAD), jnp.float32),
        in_specs=[VMEM_SPEC] * len(args),
        out_specs=VMEM_SPEC,
    )(*args)
    return out[:, :6]


# ---------------------------------------------------------------------------
# Parameter construction (deterministic, in-script) and full forward
# ---------------------------------------------------------------------------
def init_params(key, input_size, static_size, hidden, static_hidden, num_layers):
    dyn = input_size - static_size
    keys = jax.random.split(key, 64)
    kit = iter(keys)

    def u(shape, scale):
        return jax.random.uniform(next(kit), shape, jnp.float32, -scale, scale)

    k_lstm = hidden ** -0.5
    w_ih, w_hh, b = [], [], []
    for l in range(num_layers):
        in_dim = dyn if l == 0 else hidden
        wi = u((4 * hidden, in_dim), k_lstm).T                       # (in_dim, 4H)
        wi = jnp.pad(wi, ((0, hidden - in_dim), (0, 0)))             # zero-pad rows to H
        wh = u((4 * hidden, hidden), k_lstm).T                       # (H, 4H)
        bb = u((4 * hidden,), k_lstm) + u((4 * hidden,), k_lstm)     # b_ih + b_hh
        w_ih.append(wi)
        w_hh.append(wh)
        b.append(bb.reshape(1, 4 * hidden))

    def lin(in_d, out_d):
        scale = in_d ** -0.5
        return u((in_d, out_d), scale), u((1, out_d), scale)

    ws1, bs1 = lin(static_size, 256)
    ws2, bs2 = lin(256, 256)
    ws3, bs3 = lin(256, static_hidden)
    wf1, bf1 = lin(hidden + static_hidden, 256)
    wf2, bf2 = lin(256, 6)
    # zero-pad the final projection to 128 output columns -> unmasked stores
    wf2 = jnp.pad(wf2, ((0, 0), (0, OUT_PAD - 6)))
    bf2 = jnp.pad(bf2, ((0, 0), (0, OUT_PAD - 6)))

    return dict(
        hidden=hidden,
        w_ih=jnp.stack(w_ih), w_hh=jnp.stack(w_hh), b=jnp.stack(b),
        ws1=ws1, bs1=bs1, ws2=ws2, bs2=bs2, ws3=ws3, bs3=bs3,
        wf1_h=wf1[:hidden], wf1_s=wf1[hidden:], bf1=bf1,
        gamma=jnp.ones((1, 256), jnp.float32), beta=jnp.zeros((1, 256), jnp.float32),
        mean=jnp.zeros((1, 256), jnp.float32), var=jnp.ones((1, 256), jnp.float32),
        wf2=wf2, bf2=bf2,
    )


def model_forward(params, x_sir, x_interventions, x_static, is_deltas=False):
    if x_sir.ndim == 2:
        x = jnp.concatenate([x_sir, x_interventions], axis=1)[:, None, :]
    elif x_sir.ndim == 3:
        x = jnp.concatenate([x_sir, x_interventions], axis=2)
    else:
        raise ValueError('Invalid input dimensions')
    B, T, D = x.shape
    H = params['hidden']
    # t-major (T*B, D) layout, features zero-padded to H so every LSTM layer uses
    # a uniform (H, 4H) input weight (layer-0 padded rows are zero => exact)
    x_tb = jnp.transpose(x, (1, 0, 2)).reshape(T * B, D).astype(jnp.float32)
    x_tb = jnp.pad(x_tb, ((0, 0), (0, H - D)))
    return fused_forward(x_tb, x_static.astype(jnp.float32), params, is_deltas)


if __name__ == "__main__":
    key = jax.random.PRNGKey(0)

    # Small shapes consistent with the module
    B, T = 2, 8
    static_size = 7
    input_size = 12            # dynamic features = input_size - static_size = 5
    hidden = 32
    static_hidden = 16
    num_layers = 2
    d_sir, d_int = 3, 2        # 3 + 2 = 5 dynamic features

    kp, k1, k2, k3 = jax.random.split(key, 4)
    params = init_params(kp, input_size, static_size, hidden, static_hidden, num_layers)

    x_sir = jax.random.normal(k1, (B, T, d_sir), jnp.float32)
    x_interventions = jax.random.normal(k2, (B, T, d_int), jnp.float32)
    x_static = jax.random.normal(k3, (B, static_size), jnp.float32)

    out = model_forward(params, x_sir, x_interventions, x_static, is_deltas=False)
    out = jax.block_until_ready(out)

    assert out.shape == (B, 6) and out.dtype == jnp.float32
    # with is_deltas=False, first 3 and last 3 columns each normalize to 1
    assert jnp.allclose(out[:, :3].sum(axis=1), 1.0, atol=1e-5)
    assert jnp.allclose(out[:, 3:].sum(axis=1), 1.0, atol=1e-5)

    # is_deltas=True path (raw logits) also runs through the same fused kernel
    out_d = jax.block_until_ready(
        model_forward(params, x_sir, x_interventions, x_static, is_deltas=True))
    assert out_d.shape == (B, 6)

    print("KERNEL_OK")
</pallas_src>

<mosaic_0001>
module attributes {stable_mosaic.version = 11 : i64} {
  func.func @_fused_kernel(%arg0: memref<16x32xf32, #tpu.memory_space<vmem>>, %arg1: memref<2x32x128xf32, #tpu.memory_space<vmem>>, %arg2: memref<2x32x128xf32, #tpu.memory_space<vmem>>, %arg3: memref<2x1x128xf32, #tpu.memory_space<vmem>>, %arg4: memref<2x7xf32, #tpu.memory_space<vmem>>, %arg5: memref<7x256xf32, #tpu.memory_space<vmem>>, %arg6: memref<1x256xf32, #tpu.memory_space<vmem>>, %arg7: memref<256x256xf32, #tpu.memory_space<vmem>>, %arg8: memref<1x256xf32, #tpu.memory_space<vmem>>, %arg9: memref<256x16xf32, #tpu.memory_space<vmem>>, %arg10: memref<1x16xf32, #tpu.memory_space<vmem>>, %arg11: memref<32x256xf32, #tpu.memory_space<vmem>>, %arg12: memref<16x256xf32, #tpu.memory_space<vmem>>, %arg13: memref<1x256xf32, #tpu.memory_space<vmem>>, %arg14: memref<1x256xf32, #tpu.memory_space<vmem>>, %arg15: memref<1x256xf32, #tpu.memory_space<vmem>>, %arg16: memref<1x256xf32, #tpu.memory_space<vmem>>, %arg17: memref<1x256xf32, #tpu.memory_space<vmem>>, %arg18: memref<256x128xf32, #tpu.memory_space<vmem>>, %arg19: memref<1x128xf32, #tpu.memory_space<vmem>>, %arg20: memref<2x128xf32, #tpu.memory_space<vmem>>) attributes {dimension_semantics = [], scalar_prefetch = 0 : i64, scratch_operands = 0 : i64, tpu.core_type = #tpu.core_type<tc>} {
    %c0 = arith.constant 0 : index
    %c0_0 = arith.constant 0 : index
    %0 = vector.load %arg0[%c0, %c0_0] : memref<16x32xf32, #tpu.memory_space<vmem>>, vector<16x32xf32>
    %1 = tpu.iota {dimensions = array<i32: 1>} : vector<2x128xi32>
    %c64_i32 = arith.constant 64 : i32
    %2 = vector.broadcast %c64_i32 : i32 to vector<2x128xi32>
    %3 = arith.cmpi sge, %1, %2 : vector<2x128xi32>
    %c96_i32 = arith.constant 96 : i32
    %4 = vector.broadcast %c96_i32 : i32 to vector<2x128xi32>
    %5 = arith.cmpi slt, %1, %4 : vector<2x128xi32>
    %6 = arith.andi %3, %5 : vector<2x128xi1>
    %c0_1 = arith.constant 0 : index
    %c0_2 = arith.constant 0 : index
    %c0_3 = arith.constant 0 : index
    %7 = vector.load %arg2[%c0_1, %c0_2, %c0_3] : memref<2x32x128xf32, #tpu.memory_space<vmem>>, vector<1x32x128xf32>
    %8 = vector.shape_cast %7 : vector<1x32x128xf32> to vector<32x128xf32>
    %c0_4 = arith.constant 0 : index
    %c0_5 = arith.constant 0 : index
    %c0_6 = arith.constant 0 : index
    %9 = vector.load %arg1[%c0_4, %c0_5, %c0_6] : memref<2x32x128xf32, #tpu.memory_space<vmem>>, vector<1x32x128xf32>
    %10 = vector.shape_cast %9 : vector<1x32x128xf32> to vector<32x128xf32>
    %cst = arith.constant dense<0.000000e+00> : vector<16x128xf32>
    %11 = tpu.matmul %0, %10, %cst {dimension_numbers = #tpu.dot_dimension_numbers<[1], [0], [0], [1], [0, 0, 1, 1], [], []>} : vector<16x32xf32>, vector<32x128xf32>, vector<16x128xf32> -> vector<16x128xf32>
    %c0_7 = arith.constant 0 : index
    %c0_8 = arith.constant 0 : index
    %c0_9 = arith.constant 0 : index
    %12 = vector.load %arg3[%c0_7, %c0_8, %c0_9] : memref<2x1x128xf32, #tpu.memory_space<vmem>>, vector<1x1x128xf32>
    %13 = vector.shape_cast %12 : vector<1x1x128xf32> to vector<1x128xf32>
    %14 = vector.broadcast %13 : vector<1x128xf32> to vector<16x128xf32>
    %15 = arith.addf %11, %14 : vector<16x128xf32>
    %cst_10 = arith.constant 0.000000e+00 : f32
    %16 = vector.broadcast %cst_10 : f32 to vector<2x32xf32>
    %cst_11 = arith.constant 0.000000e+00 : f32
    %17 = vector.broadcast %cst_11 : f32 to vector<2x32xf32>
    %18 = vector.extract_strided_slice %15 {offsets = [0, 0], sizes = [2, 128], strides = [1, 1]} : vector<16x128xf32> to vector<2x128xf32>
    %cst_12 = arith.constant dense<0.000000e+00> : vector<2x128xf32>
    %19 = tpu.matmul %16, %8, %cst_12 {dimension_numbers = #tpu.dot_dimension_numbers<[1], [0], [0], [1], [0, 0, 1, 1], [], []>} : vector<2x32xf32>, vector<32x128xf32>, vector<2x128xf32> -> vector<2x128xf32>
    %20 = arith.addf %18, %19 : vector<2x128xf32>
    %21 = math.tanh %20 : vector<2x128xf32>
    %22 = arith.negf %20 : vector<2x128xf32>
    %23 = math.exp %22 : vector<2x128xf32>
    %cst_13 = arith.constant 1.000000e+00 : f32
    %24 = vector.broadcast %cst_13 : f32 to vector<2x128xf32>
    %25 = arith.addf %24, %23 : vector<2x128xf32>
    %26 = arith.divf %24, %25 : vector<2x128xf32>
    %27 = arith.select %6, %21, %26 : vector<2x128xi1>, vector<2x128xf32>
    %28 = vector.extract_strided_slice %27 {offsets = [0, 0], sizes = [2, 32], strides = [1, 1]} : vector<2x128xf32> to vector<2x32xf32>
    %29 = vector.extract_strided_slice %27 {offsets = [0, 32], sizes = [2, 32], strides = [1, 1]} : vector<2x128xf32> to vector<2x32xf32>
    %30 = vector.extract_strided_slice %27 {offsets = [0, 64], sizes = [2, 32], strides = [1, 1]} : vector<2x128xf32> to vector<2x32xf32>
    %31 = vector.extract_strided_slice %27 {offsets = [0, 96], sizes = [2, 32], strides = [1, 1]} : vector<2x128xf32> to vector<2x32xf32>
    %32 = arith.mulf %29, %17 : vector<2x32xf32>
    %33 = arith.mulf %28, %30 : vector<2x32xf32>
    %34 = arith.addf %32, %33 : vector<2x32xf32>
    %35 = math.tanh %34 : vector<2x32xf32>
    %36 = arith.mulf %31, %35 : vector<2x32xf32>
    %37 = vector.extract_strided_slice %15 {offsets = [2, 0], sizes = [2, 128], strides = [1, 1]} : vector<16x128xf32> to vector<2x128xf32>
    %cst_14 = arith.constant dense<0.000000e+00> : vector<2x128xf32>
    %38 = tpu.matmul %36, %8, %cst_14 {dimension_numbers = #tpu.dot_dimension_numbers<[1], [0], [0], [1], [0, 0, 1, 1], [], []>} : vector<2x32xf32>, vector<32x128xf32>, vector<2x128xf32> -> vector<2x128xf32>
    %39 = arith.addf %37, %38 : vector<2x128xf32>
    %40 = math.tanh %39 : vector<2x128xf32>
    %41 = arith.negf %39 : vector<2x128xf32>
    %42 = math.exp %41 : vector<2x128xf32>
    %cst_15 = arith.constant 1.000000e+00 : f32
    %43 = vector.broadcast %cst_15 : f32 to vector<2x128xf32>
    %44 = arith.addf %43, %42 : vector<2x128xf32>
    %45 = arith.divf %43, %44 : vector<2x128xf32>
    %46 = arith.select %6, %40, %45 : vector<2x128xi1>, vector<2x128xf32>
    %47 = vector.extract_strided_slice %46 {offsets = [0, 0], sizes = [2, 32], strides = [1, 1]} : vector<2x128xf32> to vector<2x32xf32>
    %48 = vector.extract_strided_slice %46 {offsets = [0, 32], sizes = [2, 32], strides = [1, 1]} : vector<2x128xf32> to vector<2x32xf32>
    %49 = vector.extract_strided_slice %46 {offsets = [0, 64], sizes = [2, 32], strides = [1, 1]} : vector<2x128xf32> to vector<2x32xf32>
    %50 = vector.extract_strided_slice %46 {offsets = [0, 96], sizes = [2, 32], strides = [1, 1]} : vector<2x128xf32> to vector<2x32xf32>
    %51 = arith.mulf %48, %34 : vector<2x32xf32>
    %52 = arith.mulf %47, %49 : vector<2x32xf32>
    %53 = arith.addf %51, %52 : vector<2x32xf32>
    %54 = math.tanh %53 : vector<2x32xf32>
    %55 = arith.mulf %50, %54 : vector<2x32xf32>
    %56 = vector.extract_strided_slice %15 {offsets = [4, 0], sizes = [2, 128], strides = [1, 1]} : vector<16x128xf32> to vector<2x128xf32>
    %cst_16 = arith.constant dense<0.000000e+00> : vector<2x128xf32>
    %57 = tpu.matmul %55, %8, %cst_16 {dimension_numbers = #tpu.dot_dimension_numbers<[1], [0], [0], [1], [0, 0, 1, 1], [], []>} : vector<2x32xf32>, vector<32x128xf32>, vector<2x128xf32> -> vector<2x128xf32>
    %58 = arith.addf %56, %57 : vector<2x128xf32>
    %59 = math.tanh %58 : vector<2x128xf32>
    %60 = arith.negf %58 : vector<2x128xf32>
    %61 = math.exp %60 : vector<2x128xf32>
    %cst_17 = arith.constant 1.000000e+00 : f32
    %62 = vector.broadcast %cst_17 : f32 to vector<2x128xf32>
    %63 = arith.addf %62, %61 : vector<2x128xf32>
    %64 = arith.divf %62, %63 : vector<2x128xf32>
    %65 = arith.select %6, %59, %64 : vector<2x128xi1>, vector<2x128xf32>
    %66 = vector.extract_strided_slice %65 {offsets = [0, 0], sizes = [2, 32], strides = [1, 1]} : vector<2x128xf32> to vector<2x32xf32>
    %67 = vector.extract_strided_slice %65 {offsets = [0, 32], sizes = [2, 32], strides = [1, 1]} : vector<2x128xf32> to vector<2x32xf32>
    %68 = vector.extract_strided_slice %65 {offsets = [0, 64], sizes = [2, 32], strides = [1, 1]} : vector<2x128xf32> to vector<2x32xf32>
    %69 = vector.extract_strided_slice %65 {offsets = [0, 96], sizes = [2, 32], strides = [1, 1]} : vector<2x128xf32> to vector<2x32xf32>
    %70 = arith.mulf %67, %53 : vector<2x32xf32>
    %71 = arith.mulf %66, %68 : vector<2x32xf32>
    %72 = arith.addf %70, %71 : vector<2x32xf32>
    %73 = math.tanh %72 : vector<2x32xf32>
    %74 = arith.mulf %69, %73 : vector<2x32xf32>
    %75 = vector.extract_strided_slice %15 {offsets = [6, 0], sizes = [2, 128], strides = [1, 1]} : vector<16x128xf32> to vector<2x128xf32>
    %cst_18 = arith.constant dense<0.000000e+00> : vector<2x128xf32>
    %76 = tpu.matmul %74, %8, %cst_18 {dimension_numbers = #tpu.dot_dimension_numbers<[1], [0], [0], [1], [0, 0, 1, 1], [], []>} : vector<2x32xf32>, vector<32x128xf32>, vector<2x128xf32> -> vector<2x128xf32>
    %77 = arith.addf %75, %76 : vector<2x128xf32>
    %78 = math.tanh %77 : vector<2x128xf32>
    %79 = arith.negf %77 : vector<2x128xf32>
    %80 = math.exp %79 : vector<2x128xf32>
    %cst_19 = arith.constant 1.000000e+00 : f32
    %81 = vector.broadcast %cst_19 : f32 to vector<2x128xf32>
    %82 = arith.addf %81, %80 : vector<2x128xf32>
    %83 = arith.divf %81, %82 : vector<2x128xf32>
    %84 = arith.select %6, %78, %83 : vector<2x128xi1>, vector<2x128xf32>
    %85 = vector.extract_strided_slice %84 {offsets = [0, 0], sizes = [2, 32], strides = [1, 1]} : vector<2x128xf32> to vector<2x32xf32>
    %86 = vector.extract_strided_slice %84 {offsets = [0, 32], sizes = [2, 32], strides = [1, 1]} : vector<2x128xf32> to vector<2x32xf32>
    %87 = vector.extract_strided_slice %84 {offsets = [0, 64], sizes = [2, 32], strides = [1, 1]} : vector<2x128xf32> to vector<2x32xf32>
    %88 = vector.extract_strided_slice %84 {offsets = [0, 96], sizes = [2, 32], strides = [1, 1]} : vector<2x128xf32> to vector<2x32xf32>
    %89 = arith.mulf %86, %72 : vector<2x32xf32>
    %90 = arith.mulf %85, %87 : vector<2x32xf32>
    %91 = arith.addf %89, %90 : vector<2x32xf32>
    %92 = math.tanh %91 : vector<2x32xf32>
    %93 = arith.mulf %88, %92 : vector<2x32xf32>
    %94 = vector.extract_strided_slice %15 {offsets = [8, 0], sizes = [2, 128], strides = [1, 1]} : vector<16x128xf32> to vector<2x128xf32>
    %cst_20 = arith.constant dense<0.000000e+00> : vector<2x128xf32>
    %95 = tpu.matmul %93, %8, %cst_20 {dimension_numbers = #tpu.dot_dimension_numbers<[1], [0], [0], [1], [0, 0, 1, 1], [], []>} : vector<2x32xf32>, vector<32x128xf32>, vector<2x128xf32> -> vector<2x128xf32>
    %96 = arith.addf %94, %95 : vector<2x128xf32>
    %97 = math.tanh %96 : vector<2x128xf32>
    %98 = arith.negf %96 : vector<2x128xf32>
    %99 = math.exp %98 : vector<2x128xf32>
    %cst_21 = arith.constant 1.000000e+00 : f32
    %100 = vector.broadcast %cst_21 : f32 to vector<2x128xf32>
    %101 = arith.addf %100, %99 : vector<2x128xf32>
    %102 = arith.divf %100, %101 : vector<2x128xf32>
    %103 = arith.select %6, %97, %102 : vector<2x128xi1>, vector<2x128xf32>
    %104 = vector.extract_strided_slice %103 {offsets = [0, 0], sizes = [2, 32], strides = [1, 1]} : vector<2x128xf32> to vector<2x32xf32>
    %105 = vector.extract_strided_slice %103 {offsets = [0, 32], sizes = [2, 32], strides = [1, 1]} : vector<2x128xf32> to vector<2x32xf32>
    %106 = vector.extract_strided_slice %103 {offsets = [0, 64], sizes = [2, 32], strides = [1, 1]} : vector<2x128xf32> to vector<2x32xf32>
    %107 = vector.extract_strided_slice %103 {offsets = [0, 96], sizes = [2, 32], strides = [1, 1]} : vector<2x128xf32> to vector<2x32xf32>
    %108 = arith.mulf %105, %91 : vector<2x32xf32>
    %109 = arith.mulf %104, %106 : vector<2x32xf32>
    %110 = arith.addf %108, %109 : vector<2x32xf32>
    %111 = math.tanh %110 : vector<2x32xf32>
    %112 = arith.mulf %107, %111 : vector<2x32xf32>
    %113 = vector.extract_strided_slice %15 {offsets = [10, 0], sizes = [2, 128], strides = [1, 1]} : vector<16x128xf32> to vector<2x128xf32>
    %cst_22 = arith.constant dense<0.000000e+00> : vector<2x128xf32>
    %114 = tpu.matmul %112, %8, %cst_22 {dimension_numbers = #tpu.dot_dimension_numbers<[1], [0], [0], [1], [0, 0, 1, 1], [], []>} : vector<2x32xf32>, vector<32x128xf32>, vector<2x128xf32> -> vector<2x128xf32>
    %115 = arith.addf %113, %114 : vector<2x128xf32>
    %116 = math.tanh %115 : vector<2x128xf32>
    %117 = arith.negf %115 : vector<2x128xf32>
    %118 = math.exp %117 : vector<2x128xf32>
    %cst_23 = arith.constant 1.000000e+00 : f32
    %119 = vector.broadcast %cst_23 : f32 to vector<2x128xf32>
    %120 = arith.addf %119, %118 : vector<2x128xf32>
    %121 = arith.divf %119, %120 : vector<2x128xf32>
    %122 = arith.select %6, %116, %121 : vector<2x128xi1>, vector<2x128xf32>
    %123 = vector.extract_strided_slice %122 {offsets = [0, 0], sizes = [2, 32], strides = [1, 1]} : vector<2x128xf32> to vector<2x32xf32>
    %124 = vector.extract_strided_slice %122 {offsets = [0, 32], sizes = [2, 32], strides = [1, 1]} : vector<2x128xf32> to vector<2x32xf32>
    %125 = vector.extract_strided_slice %122 {offsets = [0, 64], sizes = [2, 32], strides = [1, 1]} : vector<2x128xf32> to vector<2x32xf32>
    %126 = vector.extract_strided_slice %122 {offsets = [0, 96], sizes = [2, 32], strides = [1, 1]} : vector<2x128xf32> to vector<2x32xf32>
    %127 = arith.mulf %124, %110 : vector<2x32xf32>
    %128 = arith.mulf %123, %125 : vector<2x32xf32>
    %129 = arith.addf %127, %128 : vector<2x32xf32>
    %130 = math.tanh %129 : vector<2x32xf32>
    %131 = arith.mulf %126, %130 : vector<2x32xf32>
    %132 = vector.extract_strided_slice %15 {offsets = [12, 0], sizes = [2, 128], strides = [1, 1]} : vector<16x128xf32> to vector<2x128xf32>
    %cst_24 = arith.constant dense<0.000000e+00> : vector<2x128xf32>
    %133 = tpu.matmul %131, %8, %cst_24 {dimension_numbers = #tpu.dot_dimension_numbers<[1], [0], [0], [1], [0, 0, 1, 1], [], []>} : vector<2x32xf32>, vector<32x128xf32>, vector<2x128xf32> -> vector<2x128xf32>
    %134 = arith.addf %132, %133 : vector<2x128xf32>
    %135 = math.tanh %134 : vector<2x128xf32>
    %136 = arith.negf %134 : vector<2x128xf32>
    %137 = math.exp %136 : vector<2x128xf32>
    %cst_25 = arith.constant 1.000000e+00 : f32
    %138 = vector.broadcast %cst_25 : f32 to vector<2x128xf32>
    %139 = arith.addf %138, %137 : vector<2x128xf32>
    %140 = arith.divf %138, %139 : vector<2x128xf32>
    %141 = arith.select %6, %135, %140 : vector<2x128xi1>, vector<2x128xf32>
    %142 = vector.extract_strided_slice %141 {offsets = [0, 0], sizes = [2, 32], strides = [1, 1]} : vector<2x128xf32> to vector<2x32xf32>
    %143 = vector.extract_strided_slice %141 {offsets = [0, 32], sizes = [2, 32], strides = [1, 1]} : vector<2x128xf32> to vector<2x32xf32>
    %144 = vector.extract_strided_slice %141 {offsets = [0, 64], sizes = [2, 32], strides = [1, 1]} : vector<2x128xf32> to vector<2x32xf32>
    %145 = vector.extract_strided_slice %141 {offsets = [0, 96], sizes = [2, 32], strides = [1, 1]} : vector<2x128xf32> to vector<2x32xf32>
    %146 = arith.mulf %143, %129 : vector<2x32xf32>
    %147 = arith.mulf %142, %144 : vector<2x32xf32>
    %148 = arith.addf %146, %147 : vector<2x32xf32>
    %149 = math.tanh %148 : vector<2x32xf32>
    %150 = arith.mulf %145, %149 : vector<2x32xf32>
    %151 = vector.extract_strided_slice %15 {offsets = [14, 0], sizes = [2, 128], strides = [1, 1]} : vector<16x128xf32> to vector<2x128xf32>
    %cst_26 = arith.constant dense<0.000000e+00> : vector<2x128xf32>
    %152 = tpu.matmul %150, %8, %cst_26 {dimension_numbers = #tpu.dot_dimension_numbers<[1], [0], [0], [1], [0, 0, 1, 1], [], []>} : vector<2x32xf32>, vector<32x128xf32>, vector<2x128xf32> -> vector<2x128xf32>
    %153 = arith.addf %151, %152 : vector<2x128xf32>
    %154 = math.tanh %153 : vector<2x128xf32>
    %155 = arith.negf %153 : vector<2x128xf32>
    %156 = math.exp %155 : vector<2x128xf32>
    %cst_27 = arith.constant 1.000000e+00 : f32
    %157 = vector.broadcast %cst_27 : f32 to vector<2x128xf32>
    %158 = arith.addf %157, %156 : vector<2x128xf32>
    %159 = arith.divf %157, %158 : vector<2x128xf32>
    %160 = arith.select %6, %154, %159 : vector<2x128xi1>, vector<2x128xf32>
    %161 = vector.extract_strided_slice %160 {offsets = [0, 0], sizes = [2, 32], strides = [1, 1]} : vector<2x128xf32> to vector<2x32xf32>
    %162 = vector.extract_strided_slice %160 {offsets = [0, 32], sizes = [2, 32], strides = [1, 1]} : vector<2x128xf32> to vector<2x32xf32>
    %163 = vector.extract_strided_slice %160 {offsets = [0, 64], sizes = [2, 32], strides = [1, 1]} : vector<2x128xf32> to vector<2x32xf32>
    %164 = vector.extract_strided_slice %160 {offsets = [0, 96], sizes = [2, 32], strides = [1, 1]} : vector<2x128xf32> to vector<2x32xf32>
    %165 = arith.mulf %162, %148 : vector<2x32xf32>
    %166 = arith.mulf %161, %163 : vector<2x32xf32>
    %167 = arith.addf %165, %166 : vector<2x32xf32>
    %168 = math.tanh %167 : vector<2x32xf32>
    %169 = arith.mulf %164, %168 : vector<2x32xf32>
    %170 = tpu.concatenate %36, %55, %74, %93, %112, %131, %150, %169 in 0 : vector<2x32xf32>, vector<2x32xf32>, vector<2x32xf32>, vector<2x32xf32>, vector<2x32xf32>, vector<2x32xf32>, vector<2x32xf32>, vector<2x32xf32> -> vector<16x32xf32>
    %c1 = arith.constant 1 : index
    %c0_28 = arith.constant 0 : index
    %c0_29 = arith.constant 0 : index
    %171 = vector.load %arg2[%c1, %c0_28, %c0_29] : memref<2x32x128xf32, #tpu.memory_space<vmem>>, vector<1x32x128xf32>
    %172 = vector.shape_cast %171 : vector<1x32x128xf32> to vector<32x128xf32>
    %c1_30 = arith.constant 1 : index
    %c0_31 = arith.constant 0 : index
    %c0_32 = arith.constant 0 : index
    %173 = vector.load %arg1[%c1_30, %c0_31, %c0_32] : memref<2x32x128xf32, #tpu.memory_space<vmem>>, vector<1x32x128xf32>
    %174 = vector.shape_cast %173 : vector<1x32x128xf32> to vector<32x128xf32>
    %cst_33 = arith.constant dense<0.000000e+00> : vector<16x128xf32>
    %175 = tpu.matmul %170, %174, %cst_33 {dimension_numbers = #tpu.dot_dimension_numbers<[1], [0], [0], [1], [0, 0, 1, 1], [], []>} : vector<16x32xf32>, vector<32x128xf32>, vector<16x128xf32> -> vector<16x128xf32>
    %c1_34 = arith.constant 1 : index
    %c0_35 = arith.constant 0 : index
    %c0_36 = arith.constant 0 : index
    %176 = vector.load %arg3[%c1_34, %c0_35, %c0_36] : memref<2x1x128xf32, #tpu.memory_space<vmem>>, vector<1x1x128xf32>
    %177 = vector.shape_cast %176 : vector<1x1x128xf32> to vector<1x128xf32>
    %178 = vector.broadcast %177 : vector<1x128xf32> to vector<16x128xf32>
    %179 = arith.addf %175, %178 : vector<16x128xf32>
    %cst_37 = arith.constant 0.000000e+00 : f32
    %180 = vector.broadcast %cst_37 : f32 to vector<2x32xf32>
    %cst_38 = arith.constant 0.000000e+00 : f32
    %181 = vector.broadcast %cst_38 : f32 to vector<2x32xf32>
    %182 = vector.extract_strided_slice %179 {offsets = [0, 0], sizes = [2, 128], strides = [1, 1]} : vector<16x128xf32> to vector<2x128xf32>
    %cst_39 = arith.constant dense<0.000000e+00> : vector<2x128xf32>
    %183 = tpu.matmul %180, %172, %cst_39 {dimension_numbers = #tpu.dot_dimension_numbers<[1], [0], [0], [1], [0, 0, 1, 1], [], []>} : vector<2x32xf32>, vector<32x128xf32>, vector<2x128xf32> -> vector<2x128xf32>
    %184 = arith.addf %182, %183 : vector<2x128xf32>
    %185 = math.tanh %184 : vector<2x128xf32>
    %186 = arith.negf %184 : vector<2x128xf32>
    %187 = math.exp %186 : vector<2x128xf32>
    %cst_40 = arith.constant 1.000000e+00 : f32
    %188 = vector.broadcast %cst_40 : f32 to vector<2x128xf32>
    %189 = arith.addf %188, %187 : vector<2x128xf32>
    %190 = arith.divf %188, %189 : vector<2x128xf32>
    %191 = arith.select %6, %185, %190 : vector<2x128xi1>, vector<2x128xf32>
    %192 = vector.extract_strided_slice %191 {offsets = [0, 0], sizes = [2, 32], strides = [1, 1]} : vector<2x128xf32> to vector<2x32xf32>
    %193 = vector.extract_strided_slice %191 {offsets = [0, 32], sizes = [2, 32], strides = [1, 1]} : vector<2x128xf32> to vector<2x32xf32>
    %194 = vector.extract_strided_slice %191 {offsets = [0, 64], sizes = [2, 32], strides = [1, 1]} : vector<2x128xf32> to vector<2x32xf32>
    %195 = vector.extract_strided_slice %191 {offsets = [0, 96], sizes = [2, 32], strides = [1, 1]} : vector<2x128xf32> to vector<2x32xf32>
    %196 = arith.mulf %193, %181 : vector<2x32xf32>
    %197 = arith.mulf %192, %194 : vector<2x32xf32>
    %198 = arith.addf %196, %197 : vector<2x32xf32>
    %199 = math.tanh %198 : vector<2x32xf32>
    %200 = arith.mulf %195, %199 : vector<2x32xf32>
    %201 = vector.extract_strided_slice %179 {offsets = [2, 0], sizes = [2, 128], strides = [1, 1]} : vector<16x128xf32> to vector<2x128xf32>
    %cst_41 = arith.constant dense<0.000000e+00> : vector<2x128xf32>
    %202 = tpu.matmul %200, %172, %cst_41 {dimension_numbers = #tpu.dot_dimension_numbers<[1], [0], [0], [1], [0, 0, 1, 1], [], []>} : vector<2x32xf32>, vector<32x128xf32>, vector<2x128xf32> -> vector<2x128xf32>
    %203 = arith.addf %201, %202 : vector<2x128xf32>
    %204 = math.tanh %203 : vector<2x128xf32>
    %205 = arith.negf %203 : vector<2x128xf32>
    %206 = math.exp %205 : vector<2x128xf32>
    %cst_42 = arith.constant 1.000000e+00 : f32
    %207 = vector.broadcast %cst_42 : f32 to vector<2x128xf32>
    %208 = arith.addf %207, %206 : vector<2x128xf32>
    %209 = arith.divf %207, %208 : vector<2x128xf32>
    %210 = arith.select %6, %204, %209 : vector<2x128xi1>, vector<2x128xf32>
    %211 = vector.extract_strided_slice %210 {offsets = [0, 0], sizes = [2, 32], strides = [1, 1]} : vector<2x128xf32> to vector<2x32xf32>
    %212 = vector.extract_strided_slice %210 {offsets = [0, 32], sizes = [2, 32], strides = [1, 1]} : vector<2x128xf32> to vector<2x32xf32>
    %213 = vector.extract_strided_slice %210 {offsets = [0, 64], sizes = [2, 32], strides = [1, 1]} : vector<2x128xf32> to vector<2x32xf32>
    %214 = vector.extract_strided_slice %210 {offsets = [0, 96], sizes = [2, 32], strides = [1, 1]} : vector<2x128xf32> to vector<2x32xf32>
    %215 = arith.mulf %212, %198 : vector<2x32xf32>
    %216 = arith.mulf %211, %213 : vector<2x32xf32>
    %217 = arith.addf %215, %216 : vector<2x32xf32>
    %218 = math.tanh %217 : vector<2x32xf32>
    %219 = arith.mulf %214, %218 : vector<2x32xf32>
    %220 = vector.extract_strided_slice %179 {offsets = [4, 0], sizes = [2, 128], strides = [1, 1]} : vector<16x128xf32> to vector<2x128xf32>
    %cst_43 = arith.constant dense<0.000000e+00> : vector<2x128xf32>
    %221 = tpu.matmul %219, %172, %cst_43 {dimension_numbers = #tpu.dot_dimension_numbers<[1], [0], [0], [1], [0, 0, 1, 1], [], []>} : vector<2x32xf32>, vector<32x128xf32>, vector<2x128xf32> -> vector<2x128xf32>
    %222 = arith.addf %220, %221 : vector<2x128xf32>
    %223 = math.tanh %222 : vector<2x128xf32>
    %224 = arith.negf %222 : vector<2x128xf32>
    %225 = math.exp %224 : vector<2x128xf32>
    %cst_44 = arith.constant 1.000000e+00 : f32
    %226 = vector.broadcast %cst_44 : f32 to vector<2x128xf32>
    %227 = arith.addf %226, %225 : vector<2x128xf32>
    %228 = arith.divf %226, %227 : vector<2x128xf32>
    %229 = arith.select %6, %223, %228 : vector<2x128xi1>, vector<2x128xf32>
    %230 = vector.extract_strided_slice %229 {offsets = [0, 0], sizes = [2, 32], strides = [1, 1]} : vector<2x128xf32> to vector<2x32xf32>
    %231 = vector.extract_strided_slice %229 {offsets = [0, 32], sizes = [2, 32], strides = [1, 1]} : vector<2x128xf32> to vector<2x32xf32>
    %232 = vector.extract_strided_slice %229 {offsets = [0, 64], sizes = [2, 32], strides = [1, 1]} : vector<2x128xf32> to vector<2x32xf32>
    %233 = vector.extract_strided_slice %229 {offsets = [0, 96], sizes = [2, 32], strides = [1, 1]} : vector<2x128xf32> to vector<2x32xf32>
    %234 = arith.mulf %231, %217 : vector<2x32xf32>
    %235 = arith.mulf %230, %232 : vector<2x32xf32>
    %236 = arith.addf %234, %235 : vector<2x32xf32>
    %237 = math.tanh %236 : vector<2x32xf32>
    %238 = arith.mulf %233, %237 : vector<2x32xf32>
    %239 = vector.extract_strided_slice %179 {offsets = [6, 0], sizes = [2, 128], strides = [1, 1]} : vector<16x128xf32> to vector<2x128xf32>
    %cst_45 = arith.constant dense<0.000000e+00> : vector<2x128xf32>
    %240 = tpu.matmul %238, %172, %cst_45 {dimension_numbers = #tpu.dot_dimension_numbers<[1], [0], [0], [1], [0, 0, 1, 1], [], []>} : vector<2x32xf32>, vector<32x128xf32>, vector<2x128xf32> -> vector<2x128xf32>
    %241 = arith.addf %239, %240 : vector<2x128xf32>
    %242 = math.tanh %241 : vector<2x128xf32>
    %243 = arith.negf %241 : vector<2x128xf32>
    %244 = math.exp %243 : vector<2x128xf32>
    %cst_46 = arith.constant 1.000000e+00 : f32
    %245 = vector.broadcast %cst_46 : f32 to vector<2x128xf32>
    %246 = arith.addf %245, %244 : vector<2x128xf32>
    %247 = arith.divf %245, %246 : vector<2x128xf32>
    %248 = arith.select %6, %242, %247 : vector<2x128xi1>, vector<2x128xf32>
    %249 = vector.extract_strided_slice %248 {offsets = [0, 0], sizes = [2, 32], strides = [1, 1]} : vector<2x128xf32> to vector<2x32xf32>
    %250 = vector.extract_strided_slice %248 {offsets = [0, 32], sizes = [2, 32], strides = [1, 1]} : vector<2x128xf32> to vector<2x32xf32>
    %251 = vector.extract_strided_slice %248 {offsets = [0, 64], sizes = [2, 32], strides = [1, 1]} : vector<2x128xf32> to vector<2x32xf32>
    %252 = vector.extract_strided_slice %248 {offsets = [0, 96], sizes = [2, 32], strides = [1, 1]} : vector<2x128xf32> to vector<2x32xf32>
    %253 = arith.mulf %250, %236 : vector<2x32xf32>
    %254 = arith.mulf %249, %251 : vector<2x32xf32>
    %255 = arith.addf %253, %254 : vector<2x32xf32>
    %256 = math.tanh %255 : vector<2x32xf32>
    %257 = arith.mulf %252, %256 : vector<2x32xf32>
    %258 = vector.extract_strided_slice %179 {offsets = [8, 0], sizes = [2, 128], strides = [1, 1]} : vector<16x128xf32> to vector<2x128xf32>
    %cst_47 = arith.constant dense<0.000000e+00> : vector<2x128xf32>
    %259 = tpu.matmul %257, %172, %cst_47 {dimension_numbers = #tpu.dot_dimension_numbers<[1], [0], [0], [1], [0, 0, 1, 1], [], []>} : vector<2x32xf32>, vector<32x128xf32>, vector<2x128xf32> -> vector<2x128xf32>
    %260 = arith.addf %258, %259 : vector<2x128xf32>
    %261 = math.tanh %260 : vector<2x128xf32>
    %262 = arith.negf %260 : vector<2x128xf32>
    %263 = math.exp %262 : vector<2x128xf32>
    %cst_48 = arith.constant 1.000000e+00 : f32
    %264 = vector.broadcast %cst_48 : f32 to vector<2x128xf32>
    %265 = arith.addf %264, %263 : vector<2x128xf32>
    %266 = arith.divf %264, %265 : vector<2x128xf32>
    %267 = arith.select %6, %261, %266 : vector<2x128xi1>, vector<2x128xf32>
    %268 = vector.extract_strided_slice %267 {offsets = [0, 0], sizes = [2, 32], strides = [1, 1]} : vector<2x128xf32> to vector<2x32xf32>
    %269 = vector.extract_strided_slice %267 {offsets = [0, 32], sizes = [2, 32], strides = [1, 1]} : vector<2x128xf32> to vector<2x32xf32>
    %270 = vector.extract_strided_slice %267 {offsets = [0, 64], sizes = [2, 32], strides = [1, 1]} : vector<2x128xf32> to vector<2x32xf32>
    %271 = vector.extract_strided_slice %267 {offsets = [0, 96], sizes = [2, 32], strides = [1, 1]} : vector<2x128xf32> to vector<2x32xf32>
    %272 = arith.mulf %269, %255 : vector<2x32xf32>
    %273 = arith.mulf %268, %270 : vector<2x32xf32>
    %274 = arith.addf %272, %273 : vector<2x32xf32>
    %275 = math.tanh %274 : vector<2x32xf32>
    %276 = arith.mulf %271, %275 : vector<2x32xf32>
    %277 = vector.extract_strided_slice %179 {offsets = [10, 0], sizes = [2, 128], strides = [1, 1]} : vector<16x128xf32> to vector<2x128xf32>
    %cst_49 = arith.constant dense<0.000000e+00> : vector<2x128xf32>
    %278 = tpu.matmul %276, %172, %cst_49 {dimension_numbers = #tpu.dot_dimension_numbers<[1], [0], [0], [1], [0, 0, 1, 1], [], []>} : vector<2x32xf32>, vector<32x128xf32>, vector<2x128xf32> -> vector<2x128xf32>
    %279 = arith.addf %277, %278 : vector<2x128xf32>
    %280 = math.tanh %279 : vector<2x128xf32>
    %281 = arith.negf %279 : vector<2x128xf32>
    %282 = math.exp %281 : vector<2x128xf32>
    %cst_50 = arith.constant 1.000000e+00 : f32
    %283 = vector.broadcast %cst_50 : f32 to vector<2x128xf32>
    %284 = arith.addf %283, %282 : vector<2x128xf32>
    %285 = arith.divf %283, %284 : vector<2x128xf32>
    %286 = arith.select %6, %280, %285 : vector<2x128xi1>, vector<2x128xf32>
    %287 = vector.extract_strided_slice %286 {offsets = [0, 0], sizes = [2, 32], strides = [1, 1]} : vector<2x128xf32> to vector<2x32xf32>
    %288 = vector.extract_strided_slice %286 {offsets = [0, 32], sizes = [2, 32], strides = [1, 1]} : vector<2x128xf32> to vector<2x32xf32>
    %289 = vector.extract_strided_slice %286 {offsets = [0, 64], sizes = [2, 32], strides = [1, 1]} : vector<2x128xf32> to vector<2x32xf32>
    %290 = vector.extract_strided_slice %286 {offsets = [0, 96], sizes = [2, 32], strides = [1, 1]} : vector<2x128xf32> to vector<2x32xf32>
    %291 = arith.mulf %288, %274 : vector<2x32xf32>
    %292 = arith.mulf %287, %289 : vector<2x32xf32>
    %293 = arith.addf %291, %292 : vector<2x32xf32>
    %294 = math.tanh %293 : vector<2x32xf32>
    %295 = arith.mulf %290, %294 : vector<2x32xf32>
    %296 = vector.extract_strided_slice %179 {offsets = [12, 0], sizes = [2, 128], strides = [1, 1]} : vector<16x128xf32> to vector<2x128xf32>
    %cst_51 = arith.constant dense<0.000000e+00> : vector<2x128xf32>
    %297 = tpu.matmul %295, %172, %cst_51 {dimension_numbers = #tpu.dot_dimension_numbers<[1], [0], [0], [1], [0, 0, 1, 1], [], []>} : vector<2x32xf32>, vector<32x128xf32>, vector<2x128xf32> -> vector<2x128xf32>
    %298 = arith.addf %296, %297 : vector<2x128xf32>
    %299 = math.tanh %298 : vector<2x128xf32>
    %300 = arith.negf %298 : vector<2x128xf32>
    %301 = math.exp %300 : vector<2x128xf32>
    %cst_52 = arith.constant 1.000000e+00 : f32
    %302 = vector.broadcast %cst_52 : f32 to vector<2x128xf32>
    %303 = arith.addf %302, %301 : vector<2x128xf32>
    %304 = arith.divf %302, %303 : vector<2x128xf32>
    %305 = arith.select %6, %299, %304 : vector<2x128xi1>, vector<2x128xf32>
    %306 = vector.extract_strided_slice %305 {offsets = [0, 0], sizes = [2, 32], strides = [1, 1]} : vector<2x128xf32> to vector<2x32xf32>
    %307 = vector.extract_strided_slice %305 {offsets = [0, 32], sizes = [2, 32], strides = [1, 1]} : vector<2x128xf32> to vector<2x32xf32>
    %308 = vector.extract_strided_slice %305 {offsets = [0, 64], sizes = [2, 32], strides = [1, 1]} : vector<2x128xf32> to vector<2x32xf32>
    %309 = vector.extract_strided_slice %305 {offsets = [0, 96], sizes = [2, 32], strides = [1, 1]} : vector<2x128xf32> to vector<2x32xf32>
    %310 = arith.mulf %307, %293 : vector<2x32xf32>
    %311 = arith.mulf %306, %308 : vector<2x32xf32>
    %312 = arith.addf %310, %311 : vector<2x32xf32>
    %313 = math.tanh %312 : vector<2x32xf32>
    %314 = arith.mulf %309, %313 : vector<2x32xf32>
    %315 = vector.extract_strided_slice %179 {offsets = [14, 0], sizes = [2, 128], strides = [1, 1]} : vector<16x128xf32> to vector<2x128xf32>
    %cst_53 = arith.constant dense<0.000000e+00> : vector<2x128xf32>
    %316 = tpu.matmul %314, %172, %cst_53 {dimension_numbers = #tpu.dot_dimension_numbers<[1], [0], [0], [1], [0, 0, 1, 1], [], []>} : vector<2x32xf32>, vector<32x128xf32>, vector<2x128xf32> -> vector<2x128xf32>
    %317 = arith.addf %315, %316 : vector<2x128xf32>
    %318 = math.tanh %317 : vector<2x128xf32>
    %319 = arith.negf %317 : vector<2x128xf32>
    %320 = math.exp %319 : vector<2x128xf32>
    %cst_54 = arith.constant 1.000000e+00 : f32
    %321 = vector.broadcast %cst_54 : f32 to vector<2x128xf32>
    %322 = arith.addf %321, %320 : vector<2x128xf32>
    %323 = arith.divf %321, %322 : vector<2x128xf32>
    %324 = arith.select %6, %318, %323 : vector<2x128xi1>, vector<2x128xf32>
    %325 = vector.extract_strided_slice %324 {offsets = [0, 0], sizes = [2, 32], strides = [1, 1]} : vector<2x128xf32> to vector<2x32xf32>
    %326 = vector.extract_strided_slice %324 {offsets = [0, 32], sizes = [2, 32], strides = [1, 1]} : vector<2x128xf32> to vector<2x32xf32>
    %327 = vector.extract_strided_slice %324 {offsets = [0, 64], sizes = [2, 32], strides = [1, 1]} : vector<2x128xf32> to vector<2x32xf32>
    %328 = vector.extract_strided_slice %324 {offsets = [0, 96], sizes = [2, 32], strides = [1, 1]} : vector<2x128xf32> to vector<2x32xf32>
    %329 = arith.mulf %326, %312 : vector<2x32xf32>
    %330 = arith.mulf %325, %327 : vector<2x32xf32>
    %331 = arith.addf %329, %330 : vector<2x32xf32>
    %332 = math.tanh %331 : vector<2x32xf32>
    %333 = arith.mulf %328, %332 : vector<2x32xf32>
    %c0_55 = arith.constant 0 : index
    %c0_56 = arith.constant 0 : index
    %334 = vector.load %arg4[%c0_55, %c0_56] : memref<2x7xf32, #tpu.memory_space<vmem>>, vector<2x7xf32>
    %c0_57 = arith.constant 0 : index
    %c0_58 = arith.constant 0 : index
    %335 = vector.load %arg5[%c0_57, %c0_58] : memref<7x256xf32, #tpu.memory_space<vmem>>, vector<7x256xf32>
    %cst_59 = arith.constant dense<0.000000e+00> : vector<2x256xf32>
    %336 = tpu.matmul %334, %335, %cst_59 {dimension_numbers = #tpu.dot_dimension_numbers<[1], [0], [0], [1], [0, 0, 1, 1], [], []>} : vector<2x7xf32>, vector<7x256xf32>, vector<2x256xf32> -> vector<2x256xf32>
    %c0_60 = arith.constant 0 : index
    %c0_61 = arith.constant 0 : index
    %337 = vector.load %arg6[%c0_60, %c0_61] : memref<1x256xf32, #tpu.memory_space<vmem>>, vector<1x256xf32>
    %338 = vector.broadcast %337 : vector<1x256xf32> to vector<2x256xf32>
    %339 = arith.addf %336, %338 : vector<2x256xf32>
    %cst_62 = arith.constant 0.000000e+00 : f32
    %340 = vector.broadcast %cst_62 : f32 to vector<2x256xf32>
    %341 = arith.maximumf %339, %340 : vector<2x256xf32>
    %c0_63 = arith.constant 0 : index
    %c0_64 = arith.constant 0 : index
    %342 = vector.load %arg7[%c0_63, %c0_64] : memref<256x256xf32, #tpu.memory_space<vmem>>, vector<256x256xf32>
    %cst_65 = arith.constant dense<0.000000e+00> : vector<2x256xf32>
    %343 = tpu.matmul %341, %342, %cst_65 {dimension_numbers = #tpu.dot_dimension_numbers<[1], [0], [0], [1], [0, 0, 1, 1], [], []>} : vector<2x256xf32>, vector<256x256xf32>, vector<2x256xf32> -> vector<2x256xf32>
    %c0_66 = arith.constant 0 : index
    %c0_67 = arith.constant 0 : index
    %344 = vector.load %arg8[%c0_66, %c0_67] : memref<1x256xf32, #tpu.memory_space<vmem>>, vector<1x256xf32>
    %345 = vector.broadcast %344 : vector<1x256xf32> to vector<2x256xf32>
    %346 = arith.addf %343, %345 : vector<2x256xf32>
    %cst_68 = arith.constant 0.000000e+00 : f32
    %347 = vector.broadcast %cst_68 : f32 to vector<2x256xf32>
    %348 = arith.maximumf %346, %347 : vector<2x256xf32>
    %c0_69 = arith.constant 0 : index
    %c0_70 = arith.constant 0 : index
    %349 = vector.load %arg9[%c0_69, %c0_70] : memref<256x16xf32, #tpu.memory_space<vmem>>, vector<256x16xf32>
    %cst_71 = arith.constant dense<0.000000e+00> : vector<2x16xf32>
    %350 = tpu.matmul %348, %349, %cst_71 {dimension_numbers = #tpu.dot_dimension_numbers<[1], [0], [0], [1], [0, 0, 1, 1], [], []>} : vector<2x256xf32>, vector<256x16xf32>, vector<2x16xf32> -> vector<2x16xf32>
    %c0_72 = arith.constant 0 : index
    %c0_73 = arith.constant 0 : index
    %351 = vector.load %arg10[%c0_72, %c0_73] : memref<1x16xf32, #tpu.memory_space<vmem>>, vector<1x16xf32>
    %352 = vector.broadcast %351 : vector<1x16xf32> to vector<2x16xf32>
    %353 = arith.addf %350, %352 : vector<2x16xf32>
    %c0_74 = arith.constant 0 : index
    %c0_75 = arith.constant 0 : index
    %354 = vector.load %arg11[%c0_74, %c0_75] : memref<32x256xf32, #tpu.memory_space<vmem>>, vector<32x256xf32>
    %cst_76 = arith.constant dense<0.000000e+00> : vector<2x256xf32>
    %355 = tpu.matmul %333, %354, %cst_76 {dimension_numbers = #tpu.dot_dimension_numbers<[1], [0], [0], [1], [0, 0, 1, 1], [], []>} : vector<2x32xf32>, vector<32x256xf32>, vector<2x256xf32> -> vector<2x256xf32>
    %c0_77 = arith.constant 0 : index
    %c0_78 = arith.constant 0 : index
    %356 = vector.load %arg12[%c0_77, %c0_78] : memref<16x256xf32, #tpu.memory_space<vmem>>, vector<16x256xf32>
    %cst_79 = arith.constant dense<0.000000e+00> : vector<2x256xf32>
    %357 = tpu.matmul %353, %356, %cst_79 {dimension_numbers = #tpu.dot_dimension_numbers<[1], [0], [0], [1], [0, 0, 1, 1], [], []>} : vector<2x16xf32>, vector<16x256xf32>, vector<2x256xf32> -> vector<2x256xf32>
    %358 = arith.addf %355, %357 : vector<2x256xf32>
    %c0_80 = arith.constant 0 : index
    %c0_81 = arith.constant 0 : index
    %359 = vector.load %arg13[%c0_80, %c0_81] : memref<1x256xf32, #tpu.memory_space<vmem>>, vector<1x256xf32>
    %360 = vector.broadcast %359 : vector<1x256xf32> to vector<2x256xf32>
    %361 = arith.addf %358, %360 : vector<2x256xf32>
    %cst_82 = arith.constant 0.000000e+00 : f32
    %362 = vector.broadcast %cst_82 : f32 to vector<2x256xf32>
    %363 = arith.maximumf %361, %362 : vector<2x256xf32>
    %c0_83 = arith.constant 0 : index
    %c0_84 = arith.constant 0 : index
    %364 = vector.load %arg17[%c0_83, %c0_84] : memref<1x256xf32, #tpu.memory_space<vmem>>, vector<1x256xf32>
    %cst_85 = arith.constant 9.99999974E-6 : f32
    %365 = vector.broadcast %cst_85 : f32 to vector<1x256xf32>
    %366 = arith.addf %364, %365 : vector<1x256xf32>
    %367 = math.rsqrt %366 : vector<1x256xf32>
    %c0_86 = arith.constant 0 : index
    %c0_87 = arith.constant 0 : index
    %368 = vector.load %arg16[%c0_86, %c0_87] : memref<1x256xf32, #tpu.memory_space<vmem>>, vector<1x256xf32>
    %369 = vector.broadcast %368 : vector<1x256xf32> to vector<2x256xf32>
    %370 = arith.subf %363, %369 : vector<2x256xf32>
    %c0_88 = arith.constant 0 : index
    %c0_89 = arith.constant 0 : index
    %371 = vector.load %arg14[%c0_88, %c0_89] : memref<1x256xf32, #tpu.memory_space<vmem>>, vector<1x256xf32>
    %372 = arith.mulf %367, %371 : vector<1x256xf32>
    %373 = vector.broadcast %372 : vector<1x256xf32> to vector<2x256xf32>
    %374 = arith.mulf %370, %373 : vector<2x256xf32>
    %c0_90 = arith.constant 0 : index
    %c0_91 = arith.constant 0 : index
    %375 = vector.load %arg15[%c0_90, %c0_91] : memref<1x256xf32, #tpu.memory_space<vmem>>, vector<1x256xf32>
    %376 = vector.broadcast %375 : vector<1x256xf32> to vector<2x256xf32>
    %377 = arith.addf %374, %376 : vector<2x256xf32>
    %c0_92 = arith.constant 0 : index
    %c0_93 = arith.constant 0 : index
    %378 = vector.load %arg18[%c0_92, %c0_93] : memref<256x128xf32, #tpu.memory_space<vmem>>, vector<256x128xf32>
    %cst_94 = arith.constant dense<0.000000e+00> : vector<2x128xf32>
    %379 = tpu.matmul %377, %378, %cst_94 {dimension_numbers = #tpu.dot_dimension_numbers<[1], [0], [0], [1], [0, 0, 1, 1], [], []>} : vector<2x256xf32>, vector<256x128xf32>, vector<2x128xf32> -> vector<2x128xf32>
    %c0_95 = arith.constant 0 : index
    %c0_96 = arith.constant 0 : index
    %380 = vector.load %arg19[%c0_95, %c0_96] : memref<1x128xf32, #tpu.memory_space<vmem>>, vector<1x128xf32>
    %381 = vector.broadcast %380 : vector<1x128xf32> to vector<2x128xf32>
    %382 = arith.addf %379, %381 : vector<2x128xf32>
    %383 = arith.negf %382 : vector<2x128xf32>
    %384 = math.exp %383 : vector<2x128xf32>
    %cst_97 = arith.constant 1.000000e+00 : f32
    %385 = vector.broadcast %cst_97 : f32 to vector<2x128xf32>
    %386 = arith.addf %385, %384 : vector<2x128xf32>
    %387 = arith.divf %385, %386 : vector<2x128xf32>
    %388 = tpu.iota {dimensions = array<i32: 1>} : vector<2x128xi32>
    %c3_i32 = arith.constant 3 : i32
    %389 = vector.broadcast %c3_i32 : i32 to vector<2x128xi32>
    %390 = arith.cmpi slt, %388, %389 : vector<2x128xi32>
    %c3_i32_98 = arith.constant 3 : i32
    %391 = vector.broadcast %c3_i32_98 : i32 to vector<2x128xi32>
    %392 = arith.cmpi sge, %388, %391 : vector<2x128xi32>
    %c6_i32 = arith.constant 6 : i32
    %393 = vector.broadcast %c6_i32 : i32 to vector<2x128xi32>
    %394 = arith.cmpi slt, %388, %393 : vector<2x128xi32>
    %395 = arith.andi %392, %394 : vector<2x128xi1>
    %cst_99 = arith.constant 0.000000e+00 : f32
    %396 = vector.broadcast %cst_99 : f32 to vector<2x128xf32>
    %397 = arith.select %390, %387, %396 : vector<2x128xi1>, vector<2x128xf32>
    %cst_100 = arith.constant dense<0.000000e+00> : vector<2xf32>
    %398 = vector.multi_reduction <add>, %397, %cst_100 [1] : vector<2x128xf32> to vector<2xf32>
    %399 = vector.shape_cast %398 : vector<2xf32> to vector<2x1xf32>
    %cst_101 = arith.constant 0.000000e+00 : f32
    %400 = vector.broadcast %cst_101 : f32 to vector<2x128xf32>
    %401 = arith.select %395, %387, %400 : vector<2x128xi1>, vector<2x128xf32>
    %cst_102 = arith.constant dense<0.000000e+00> : vector<2xf32>
    %402 = vector.multi_reduction <add>, %401, %cst_102 [1] : vector<2x128xf32> to vector<2xf32>
    %403 = vector.shape_cast %402 : vector<2xf32> to vector<2x1xf32>
    %404 = vector.shape_cast %399 : vector<2x1xf32> to vector<2x1xf32>
    %405 = vector.broadcast %404 : vector<2x1xf32> to vector<2x128xf32>
    %406 = vector.shape_cast %403 : vector<2x1xf32> to vector<2x1xf32>
    %407 = vector.broadcast %406 : vector<2x1xf32> to vector<2x128xf32>
    %408 = arith.select %390, %405, %407 : vector<2x128xi1>, vector<2x128xf32>
    %409 = arith.divf %387, %408 : vector<2x128xf32>
    %c0_103 = arith.constant 0 : index
    %c0_104 = arith.constant 0 : index
    %410 = vector.load %arg20[%c0_103, %c0_104] : memref<2x128xf32, #tpu.memory_space<vmem>>, vector<2x128xf32>
    tpu.vector_store %arg20[%c0_103, %c0_104], %409 {strides = array<i32>} : memref<2x128xf32, #tpu.memory_space<vmem>>, vector<2x128xf32>,
    return
  }
}

</mosaic_0001>

<bundles_post_ra>
// kernel: tpu_custom_call.1
= control target key start
LH: loop header
LB: loop body
LE: loop exit
PB: predicated region body
PF: predicated region fallthrough
CT: control target
= control target key end

     0   :  { %s4873_s0 = inlined_call_operand.hbm [shape: f32[16,32], index: 0, kind: input, shape index: {}]   ;;  %s4874_s1 = inlined_call_operand.vmem [shape: f32[2,32,128], index: 1, kind: input, shape index: {}]   ;;  %s4875_s2 = inlined_call_operand.hbm [shape: f32[2,32,128], index: 2, kind: input, shape index: {}]   ;;  %s4876_s3 = inlined_call_operand.vmem [shape: f32[2,1,128], index: 3, kind: input, shape index: {}]   ;;  %s4877_s4 = inlined_call_operand.vmem [shape: f32[2,7], index: 4, kind: input, shape index: {}]   ;;  %s4878_s5 = inlined_call_operand.hbm [shape: f32[7,256], index: 5, kind: input, shape index: {}]   ;;  %s4879_s6 = inlined_call_operand.hbm [shape: f32[1,256], index: 6, kind: input, shape index: {}]   ;;  %s4880_s7 = inlined_call_operand.hbm [shape: f32[256,256], index: 7, kind: input, shape index: {}]   ;;  %s4881_s8 = inlined_call_operand.hbm [shape: f32[1,256], index: 8, kind: input, shape index: {}]   ;;  %s4882_s9 = inlined_call_operand.vmem [shape: f32[256,16], index: 9, kind: input, shape index: {}]   ;;  %s4883_s10 = inlined_call_operand.hbm [shape: f32[1,16], index: 10, kind: input, shape index: {}]   ;;  %s4884_s11 = inlined_call_operand.hbm [shape: f32[32,256], index: 11, kind: input, shape index: {}]   ;;  %s4885_s12 = inlined_call_operand.vmem [shape: f32[16,256], index: 12, kind: input, shape index: {}]   ;;  %s4886_s13 = inlined_call_operand.hbm [shape: f32[1,256], index: 13, kind: input, shape index: {}]   ;;  %s4887_s14 = inlined_call_operand.hbm [shape: f32[1,256], index: 14, kind: input, shape index: {}]   ;;  %s4888_s15 = inlined_call_operand.hbm [shape: f32[1,256], index: 15, kind: input, shape index: {}]   ;;  %s4889_s16 = inlined_call_operand.hbm [shape: f32[1,256], index: 16, kind: input, shape index: {}]   ;;  %s4890_s17 = inlined_call_operand.hbm [shape: f32[1,256], index: 17, kind: input, shape index: {}]   ;;  %s4891_s18 = inlined_call_operand.vmem [shape: f32[256,128], index: 18, kind: input, shape index: {}]   ;;  %s4892_s19 = inlined_call_operand.vmem [shape: f32[1,128], index: 19, kind: input, shape index: {}]   ;;  %s4893_s20 = inlined_call_operand.hbm [shape: f32[2,128], index: 20, kind: output, shape index: {}]  }
   0x1   :  { %4898 = sst [smem:[#allocation32_spill]] %s4873_s0 }
   0x2   :  { %4899 = sst [smem:[#allocation33_spill]] %s4874_s1 }
   0x3   :  { %4900 = sst [smem:[#allocation34_spill]] %s4875_s2 }
   0x4   :  { %4901 = sst [smem:[#allocation35_spill]] %s4876_s3 }
   0x5   :  { %4902 = sst [smem:[#allocation36_spill]] %s4877_s4 }
   0x6   :  { %25 = vsyncpa [#allocation3], 0 }
   0x7   :  { %26 = vsyncpa [#allocation6], 0 }
   0x8   :  { %27 = vsyncpa [#allocation9], 0 }
   0x9   :  { %28 = vsyncpa [#allocation12], 0 }
   0xa   :  { %29 = vsyncpa [#allocation15], 0 }
   0xb   :  { %30 = vsyncpa [#allocation18], 0 }
   0xc   :  { %31 = vsyncpa [#allocation21], 0 }
   0xd   :  { %32 = vsyncpa [#allocation4], 0  ;;  %s4018_s1 = smov [#allocation5]   ;;  %s4019_s23 = smov [#allocation8]  }
   0xe   :  { %s52_s22 = sshll.u32 %s4018_s1, 4  ;;  %s79_s24 = sshll.u32 %s4019_s23, 4  ;;  %s53_s22 = int_to_ptr.vmem [resolvable:$true] %s52_s22  ;;  %s80_s24 = int_to_ptr.vmem [resolvable:$true] %s79_s24 }
   0xf   :  { %s4903_s3 = sld [smem:[#allocation34_spill]] }
  0x15   :  { %s3694_s26 = scalar_lea.hbm %s4903_s3, 1024 }
  0x16   :  { %p3695_p0 = scmp.ne.s32.totalorder %s4903_s3, %s3694_s26  ;;  %p3698_p1 = scmp.lt.u32.totalorder %s3694_s26, %s4903_s3 }
  0x18   :  { %p3700_p2 = pnand %p3698_p1, %p3695_p0 }
  0x1a   :  { %3703 = shalt.err (!%p3700_p2)
}
  0x1b   :  { %s3704_s30 = scalar_lea.vmem %s53_s22, 1024  ;;  %p3709_p4 = scmp.lt.s32.totalorder %s53_s22, %s53_s22 }
  0x1c   :  { %p3705_p3 = scmp.ne.s32.totalorder %s53_s22, %s3704_s30  ;;  %p3710_p5 = scmp.lt.s32.totalorder %s3704_s30, %s3704_s30 }
  0x1e   :  { %p3711_p6 = por %p3710_p5, %p3709_p4 }
  0x20   :  { %p3712_p7 = pnand %p3711_p6, %p3705_p3 }
  0x22   :  { %3715 = shalt.err (!%p3712_p7)
}
  0x23   :  { %s4020_s0 = smov 128   ;;  %s4021_s21 = smov 8  }
  0x24   :  { %58 = dma.hbm_to_vmem [thread:$0]  %s4903_s3, 1024, %s53_s22, [#allocation6], %s4020_s0, %s4020_s0, %s4021_s21  }
  0x25   :  { %s3716_s26 = scalar_lea.hbm %s4879_s6, 32 }
  0x26   :  { %p3717_p8 = scmp.ne.s32.totalorder %s4879_s6, %s3716_s26  ;;  %p3720_p9 = scmp.lt.u32.totalorder %s3716_s26, %s4879_s6 }
  0x28   :  { %p3722_p10 = pnand %p3720_p9, %p3717_p8 }
  0x2a   :  { %3725 = shalt.err (!%p3722_p10)
}
  0x2b   :  { %s3726_s30 = scalar_lea.vmem %s80_s24, 32  ;;  %p3731_p12 = scmp.lt.s32.totalorder %s80_s24, %s80_s24 }
  0x2c   :  { %p3727_p11 = scmp.ne.s32.totalorder %s80_s24, %s3726_s30  ;;  %p3732_p13 = scmp.lt.s32.totalorder %s3726_s30, %s3726_s30 }
  0x2e   :  { %p3733_p0 = por %p3732_p13, %p3731_p12 }
  0x30   :  { %p3734_p1 = pnand %p3733_p0, %p3727_p11 }
  0x32   :  { %3737 = shalt.err (!%p3734_p1)
}
  0x33   :  { %82 = dma.hbm_to_vmem [thread:$0]  %s4879_s6, 32, %s80_s24, [#allocation9]  }
  0x34   :  { %s4022_s1 = smov [#allocation11]   ;;  %s3738_s26 = scalar_lea.hbm %s4881_s8, 32 }
  0x35   :  { %s101_s23 = sshll.u32 %s4022_s1, 4  ;;  %p3739_p2 = scmp.ne.s32.totalorder %s4881_s8, %s3738_s26  ;;  %s102_s23 = int_to_ptr.vmem [resolvable:$true] %s101_s23 }
  0x36   :  { %p3742_p3 = scmp.lt.u32.totalorder %s3738_s26, %s4881_s8 }
  0x38   :  { %p3744_p4 = pnand %p3742_p3, %p3739_p2 }
  0x3a   :  { %3747 = shalt.err (!%p3744_p4)
}
  0x3b   :  { %s3748_s30 = scalar_lea.vmem %s102_s23, 32  ;;  %p3753_p6 = scmp.lt.s32.totalorder %s102_s23, %s102_s23 }
  0x3c   :  { %p3749_p5 = scmp.ne.s32.totalorder %s102_s23, %s3748_s30  ;;  %p3754_p7 = scmp.lt.s32.totalorder %s3748_s30, %s3748_s30 }
  0x3e   :  { %p3755_p8 = por %p3754_p7, %p3753_p6 }
  0x40   :  { %p3756_p9 = pnand %p3755_p8, %p3749_p5 }
  0x42   :  { %3759 = shalt.err (!%p3756_p9)
}
  0x43   :  { %104 = dma.hbm_to_vmem [thread:$0]  %s4881_s8, 32, %s102_s23, [#allocation12]  }
  0x44   :  { %s4023_s22 = smov [#allocation14]   ;;  %s4024_s1 = smov [#allocation17]  }
  0x45   :  { %s122_s3 = sshll.u32 %s4023_s22, 4  ;;  %s147_s2 = sshll.u32 %s4024_s1, 4  ;;  %s123_s3 = int_to_ptr.vmem [resolvable:$true] %s122_s3  ;;  %s148_s2 = int_to_ptr.vmem [resolvable:$true] %s147_s2 }
  0x46   :  { %s3760_s27 = scalar_lea.hbm %s4884_s11, 1024 }
  0x47   :  { %p3761_p10 = scmp.ne.s32.totalorder %s4884_s11, %s3760_s27  ;;  %p3764_p11 = scmp.lt.u32.totalorder %s3760_s27, %s4884_s11 }
  0x49   :  { %p3766_p12 = pnand %p3764_p11, %p3761_p10 }
  0x4b   :  { %3769 = shalt.err (!%p3766_p12)
}
  0x4c   :  { %s3770_s8 = scalar_lea.vmem %s123_s3, 1024  ;;  %p3775_p0 = scmp.lt.s32.totalorder %s123_s3, %s123_s3 }
  0x4d   :  { %p3771_p13 = scmp.ne.s32.totalorder %s123_s3, %s3770_s8  ;;  %p3776_p1 = scmp.lt.s32.totalorder %s3770_s8, %s3770_s8 }
  0x4f   :  { %p3777_p2 = por %p3776_p1, %p3775_p0 }
  0x51   :  { %p3778_p3 = pnand %p3777_p2, %p3771_p13 }
  0x53   :  { %3781 = shalt.err (!%p3778_p3)
}
  0x54   :  { %s4025_s23 = smov 256   ;;  %s4026_s6 = smov 16  }
  0x55   :  { %128 = dma.hbm_to_vmem [thread:$0]  %s4884_s11, 1024, %s123_s3, [#allocation15], %s4025_s23, %s4025_s23, %s4026_s6  }
  0x56   :  { %s3782_s26 = scalar_lea.hbm %s4887_s14, 32 }
  0x57   :  { %p3783_p4 = scmp.ne.s32.totalorder %s4887_s14, %s3782_s26  ;;  %p3786_p5 = scmp.lt.u32.totalorder %s3782_s26, %s4887_s14 }
  0x59   :  { %p3788_p6 = pnand %p3786_p5, %p3783_p4 }
  0x5b   :  { %3791 = shalt.err (!%p3788_p6)
}
  0x5c   :  { %s3792_s30 = scalar_lea.vmem %s148_s2, 32  ;;  %p3797_p8 = scmp.lt.s32.totalorder %s148_s2, %s148_s2 }
  0x5d   :  { %p3793_p7 = scmp.ne.s32.totalorder %s148_s2, %s3792_s30  ;;  %p3798_p9 = scmp.lt.s32.totalorder %s3792_s30, %s3792_s30 }
  0x5f   :  { %p3799_p10 = por %p3798_p9, %p3797_p8 }
  0x61   :  { %p3800_p11 = pnand %p3799_p10, %p3793_p7 }
  0x63   :  { %3803 = shalt.err (!%p3800_p11)
}
  0x64   :  { %150 = dma.hbm_to_vmem [thread:$0]  %s4887_s14, 32, %s148_s2, [#allocation18]  }
  0x65   :  { %s4027_s8 = smov [#allocation20]   ;;  %s4028_s22 = smov [#allocation2]  }
  0x66   :  { %s167_s24 = sshll.u32 %s4027_s8, 4  ;;  %s38_s1 = sshll.u32 %s4028_s22, 4  ;;  %s168_s24 = int_to_ptr.vmem [resolvable:$true] %s167_s24  ;;  %s39_s1 = int_to_ptr.vmem [resolvable:$true] %s38_s1 }
  0x67   :  { %s3804_s27 = scalar_lea.hbm %s4889_s16, 32 }
  0x68   :  { %p3805_p12 = scmp.ne.s32.totalorder %s4889_s16, %s3804_s27  ;;  %p3808_p13 = scmp.lt.u32.totalorder %s3804_s27, %s4889_s16 }
  0x6a   :  { %p3810_p0 = pnand %p3808_p13, %p3805_p12 }
  0x6c   :  { %3813 = shalt.err (!%p3810_p0)
}
  0x6d   :  { %s3814_s14 = scalar_lea.vmem %s168_s24, 32  ;;  %p3819_p2 = scmp.lt.s32.totalorder %s168_s24, %s168_s24 }
  0x6e   :  { %p3815_p1 = scmp.ne.s32.totalorder %s168_s24, %s3814_s14  ;;  %p3820_p3 = scmp.lt.s32.totalorder %s3814_s14, %s3814_s14 }
  0x70   :  { %p3821_p4 = por %p3820_p3, %p3819_p2 }
  0x72   :  { %p3822_p5 = pnand %p3821_p4, %p3815_p1 }
  0x74   :  { %3825 = shalt.err (!%p3822_p5)
}
  0x75   :  { %170 = dma.hbm_to_vmem [thread:$0]  %s4889_s16, 32, %s168_s24, [#allocation21]  }
  0x76   :  { %s4904_s22 = sld [smem:[#allocation32_spill]] }
  0x7c   :  { %s3826_s25 = scalar_lea.hbm %s4904_s22, 256 }
  0x7d   :  { %p3827_p6 = scmp.ne.s32.totalorder %s4904_s22, %s3826_s25  ;;  %p3830_p7 = scmp.lt.u32.totalorder %s3826_s25, %s4904_s22 }
  0x7f   :  { %p3832_p8 = pnand %p3830_p7, %p3827_p6 }
  0x81   :  { %3835 = shalt.err (!%p3832_p8)
}
  0x82   :  { %s3836_s29 = scalar_lea.vmem %s39_s1, 256  ;;  %p3841_p10 = scmp.lt.s32.totalorder %s39_s1, %s39_s1 }
  0x83   :  { %p3837_p9 = scmp.ne.s32.totalorder %s39_s1, %s3836_s29  ;;  %p3842_p11 = scmp.lt.s32.totalorder %s3836_s29, %s3836_s29 }
  0x85   :  { %p3843_p12 = por %p3842_p11, %p3841_p10 }
  0x87   :  { %p3844_p13 = pnand %p3843_p12, %p3837_p9 }
  0x89   :  { %3847 = shalt.err (!%p3844_p13)
}
  0x8a   :  { %44 = dma.hbm_to_vmem [thread:$0]  %s4904_s22, 256, %s39_s1, [#allocation3], %s4020_s0, %s4020_s0, %s4021_s21  }
  0x8b   :  { %s4029_s30 = smov [#allocation7]   ;;  %s4030_s2 = smov [#allocation10]  }
  0x8c   :  { %s69_s14 = sshll.u32 %s4029_s30, 4  ;;  %s88_s11 = sshll.u32 %s4030_s2, 4  ;;  %s70_s14 = int_to_ptr.vmem [resolvable:$true] %s69_s14  ;;  %s89_s11 = int_to_ptr.vmem [resolvable:$true] %s88_s11 }
  0x8d   :  { %s3848_s25 = scalar_lea.hbm %s4878_s5, 256 }
  0x8e   :  { %p3849_p0 = scmp.ne.s32.totalorder %s4878_s5, %s3848_s25  ;;  %p3852_p1 = scmp.lt.u32.totalorder %s3848_s25, %s4878_s5 }
  0x90   :  { %p3854_p2 = pnand %p3852_p1, %p3849_p0 }
  0x92   :  { %3857 = shalt.err (!%p3854_p2)
}
  0x93   :  { %s3858_s0 = scalar_lea.vmem %s70_s14, 256  ;;  %p3863_p4 = scmp.lt.s32.totalorder %s70_s14, %s70_s14 }
  0x94   :  { %p3859_p3 = scmp.ne.s32.totalorder %s70_s14, %s3858_s0  ;;  %p3864_p5 = scmp.lt.s32.totalorder %s3858_s0, %s3858_s0 }
  0x96   :  { %p3865_p6 = por %p3864_p5, %p3863_p4 }
  0x98   :  { %p3866_p7 = pnand %p3865_p6, %p3859_p3 }
  0x9a   :  { %3869 = shalt.err (!%p3866_p7)
}
  0x9b   :  { %72 = dma.hbm_to_vmem [thread:$0]  %s4878_s5, 256, %s70_s14, [#allocation6]  }
  0x9c   :  { %s3870_s16 = scalar_lea.hbm %s4880_s7, 8192 }
  0x9d   :  { %p3871_p8 = scmp.ne.s32.totalorder %s4880_s7, %s3870_s16  ;;  %p3874_p9 = scmp.lt.u32.totalorder %s3870_s16, %s4880_s7 }
  0x9f   :  { %p3876_p10 = pnand %p3874_p9, %p3871_p8 }
  0xa1   :  { %3879 = shalt.err (!%p3876_p10)
}
  0xa2   :  { %s3880_s8 = scalar_lea.vmem %s89_s11, 8192  ;;  %p3885_p12 = scmp.lt.s32.totalorder %s89_s11, %s89_s11 }
  0xa3   :  { %p3881_p11 = scmp.ne.s32.totalorder %s89_s11, %s3880_s8  ;;  %p3886_p13 = scmp.lt.s32.totalorder %s3880_s8, %s3880_s8 }
  0xa5   :  { %p3887_p0 = por %p3886_p13, %p3885_p12 }
  0xa7   :  { %p3888_p1 = pnand %p3887_p0, %p3881_p11 }
  0xa9   :  { %3891 = shalt.err (!%p3888_p1)
}
  0xaa   :  { %94 = dma.hbm_to_vmem [thread:$0]  %s4880_s7, 8192, %s89_s11, [#allocation9], %s4025_s23, %s4025_s23, %s4026_s6  }
  0xab   :  { %s4031_s25 = smov [#allocation13]   ;;  %s4032_s27 = smov [#allocation16]  }
  0xac   :  { %s113_s26 = sshll.u32 %s4031_s25, 4  ;;  %s137_s28 = sshll.u32 %s4032_s27, 4  ;;  %s114_s26 = int_to_ptr.vmem [resolvable:$true] %s113_s26  ;;  %s138_s28 = int_to_ptr.vmem [resolvable:$true] %s137_s28 }
  0xad   :  { %s3892_s21 = scalar_lea.hbm %s4883_s10, 16 }
  0xae   :  { %p3893_p2 = scmp.ne.s32.totalorder %s4883_s10, %s3892_s21  ;;  %p3896_p3 = scmp.lt.u32.totalorder %s3892_s21, %s4883_s10 }
  0xb0   :  { %p3898_p4 = pnand %p3896_p3, %p3893_p2 }
  0xb2   :  { %3901 = shalt.err (!%p3898_p4)
}
  0xb3   :  { %s3902_s7 = scalar_lea.vmem %s114_s26, 16  ;;  %s3906_s23 = scalar_lea.vmem %s114_s26, 32 }
  0xb4   :  { %p3903_p5 = scmp.ne.s32.totalorder %s114_s26, %s3902_s7  ;;  %p3907_p6 = scmp.lt.s32.totalorder %s114_s26, %s114_s26 }
  0xb5   :  { %p3908_p7 = scmp.lt.s32.totalorder %s3906_s23, %s3902_s7 }
  0xb7   :  { %p3909_p8 = por %p3908_p7, %p3907_p6 }
  0xb9   :  { %p3910_p9 = pnand %p3909_p8, %p3903_p5 }
  0xbb   :  { %3913 = shalt.err (!%p3910_p9)
}
  0xbc   :  { %116 = dma.hbm_to_vmem [thread:$0]  %s4883_s10, 16, %s114_s26, [#allocation12]  }
  0xbd   :  { %s3914_s2 = scalar_lea.hbm %s4886_s13, 32 }
  0xbe   :  { %p3915_p10 = scmp.ne.s32.totalorder %s4886_s13, %s3914_s2  ;;  %p3918_p11 = scmp.lt.u32.totalorder %s3914_s2, %s4886_s13 }
  0xc0   :  { %p3920_p12 = pnand %p3918_p11, %p3915_p10 }
  0xc2   :  { %3923 = shalt.err (!%p3920_p12)
}
  0xc3   :  { %s3924_s25 = scalar_lea.vmem %s138_s28, 32  ;;  %p3929_p0 = scmp.lt.s32.totalorder %s138_s28, %s138_s28 }
  0xc4   :  { %p3925_p13 = scmp.ne.s32.totalorder %s138_s28, %s3924_s25  ;;  %p3930_p1 = scmp.lt.s32.totalorder %s3924_s25, %s3924_s25 }
  0xc6   :  { %p3931_p2 = por %p3930_p1, %p3929_p0 }
  0xc8   :  { %p3932_p3 = pnand %p3931_p2, %p3925_p13 }
  0xca   :  { %3935 = shalt.err (!%p3932_p3)
}
  0xcb   :  { %140 = dma.hbm_to_vmem [thread:$0]  %s4886_s13, 32, %s138_s28, [#allocation15]  }
  0xcc   :  { %s4033_s27 = smov [#allocation19]   ;;  %s4034_s0 = smov [#allocation22]  }
  0xcd   :  { %s157_s4 = sshll.u32 %s4033_s27, 4  ;;  %s177_s21 = sshll.u32 %s4034_s0, 4  ;;  %s158_s4 = int_to_ptr.vmem [resolvable:$true] %s157_s4  ;;  %s178_s21 = int_to_ptr.vmem [resolvable:$true] %s177_s21 }
  0xce   :  { %s3936_s29 = scalar_lea.hbm %s4888_s15, 32 }
  0xcf   :  { %p3937_p4 = scmp.ne.s32.totalorder %s4888_s15, %s3936_s29  ;;  %p3940_p5 = scmp.lt.u32.totalorder %s3936_s29, %s4888_s15 }
  0xd1   :  { %p3942_p6 = pnand %p3940_p5, %p3937_p4 }
  0xd3   :  { %3945 = shalt.err (!%p3942_p6)
}
  0xd4   :  { %s3946_s13 = scalar_lea.vmem %s158_s4, 32  ;;  %p3951_p8 = scmp.lt.s32.totalorder %s158_s4, %s158_s4 }
  0xd5   :  { %p3947_p7 = scmp.ne.s32.totalorder %s158_s4, %s3946_s13  ;;  %p3952_p9 = scmp.lt.s32.totalorder %s3946_s13, %s3946_s13 }
  0xd7   :  { %p3953_p10 = por %p3952_p9, %p3951_p8 }
  0xd9   :  { %p3954_p11 = pnand %p3953_p10, %p3947_p7 }
  0xdb   :  { %3957 = shalt.err (!%p3954_p11)
}
  0xdc   :  { %160 = dma.hbm_to_vmem [thread:$0]  %s4888_s15, 32, %s158_s4, [#allocation18]  }
  0xdd   :  { %s3958_s2 = scalar_lea.hbm %s4890_s17, 32 }
  0xde   :  { %p3959_p12 = scmp.ne.s32.totalorder %s4890_s17, %s3958_s2  ;;  %p3962_p13 = scmp.lt.u32.totalorder %s3958_s2, %s4890_s17 }
  0xe0   :  { %p3964_p0 = pnand %p3962_p13, %p3959_p12 }
  0xe2   :  { %3967 = shalt.err (!%p3964_p0)
}
  0xe3   :  { %s3968_s25 = scalar_lea.vmem %s178_s21, 32  ;;  %p3973_p2 = scmp.lt.s32.totalorder %s178_s21, %s178_s21 }
  0xe4   :  { %p3969_p1 = scmp.ne.s32.totalorder %s178_s21, %s3968_s25  ;;  %p3974_p3 = scmp.lt.s32.totalorder %s3968_s25, %s3968_s25 }
  0xe6   :  { %p3975_p4 = por %p3974_p3, %p3973_p2 }
  0xe8   :  { %p3976_p5 = pnand %p3975_p4, %p3969_p1 }
  0xea   :  { %3979 = shalt.err (!%p3976_p5)
}
  0xeb   :  { %180 = dma.hbm_to_vmem [thread:$0]  %s4890_s17, 32, %s178_s21, [#allocation21]  }
  0xec   :  { %4002 = dma.done.wait [#allocation3], 256  }
  0xed   :  { %4003 = vsyncadd [#allocation3], 4294967040 }
  0xee   :  { %4004 = dma.done.wait [#allocation6], 1280  }
  0xef   :  { %4005 = vsyncadd [#allocation6], 4294966016 }
  0xf0   :  { %4006 = dma.done.wait [#allocation9], 8224  }
  0xf1   :  { %4007 = vsyncadd [#allocation9], 4294959072 }
  0xf2   :  { %4008 = dma.done.wait [#allocation12], 48  }
  0xf3   :  { %4009 = vsyncadd [#allocation12], 4294967248 }
  0xf4   :  { %4010 = dma.done.wait [#allocation15], 1056  }
  0xf5   :  { %4011 = vsyncadd [#allocation15], 4294966240 }
  0xf6   :  { %4012 = dma.done.wait [#allocation18], 64  }
  0xf7   :  { %4013 = vsyncadd [#allocation18], 4294967232 }
  0xf8   :  { %4014 = dma.done.wait [#allocation21], 64  }
  0xf9   :  { %4015 = vsyncadd [#allocation21], 4294967232  ;;  %v4035_v0 = vmov 0.0|0.0   ;;  %vm4036_vm0 = vmmov 0   ;;  %v4037_v1 = vmov 0.0   ;;  %vm246_vm1 = vcmask 261120  }
  0xfa   :  { %3295 = vmatprep.subr.bf16.mxu0 %v4035_v0  ;;  %3113 = vmatprep.mubr.msk.f32.mxu0 %vm4036_vm0, %v4037_v1  ;;  %s4905_s27 = sld [smem:[#allocation33_spill]]  ;;  %v224_v7 = vld [vmem:[#allocation2] sm:$0xff]  ;;  %v231_v9 = vld [vmem:[#allocation5] sm:$0xff]  ;;  %v232_v10 = vld [vmem:[#allocation5 + $0x8] sm:$0xff]  ;;  %s4906_s23 = sld [smem:[#allocation35_spill]]  ;;  %v226_v26 = vlaneseq  ;;  %vm1178_vm5 = vcmask 1041408  }
  0xfb   :  { %3091 = vmatprep.mubr.msk.f32.mxu1 %vm246_vm1, %v224_v7  ;;  %v4330_v11 = vpack.c.bf16 %v232_v10, %v231_v9  ;;  %v233_v12 = vld [vmem:[#allocation5 + $0x10] sm:$0xff]  ;;  %v234_v13 = vld [vmem:[#allocation5 + $0x18] sm:$0xff]  ;;  %s4038_s6 = smov 64   ;;  %s4039_s13 = smov 32   ;;  %vm1180_vm6 = vcmask 1043456   ;;  %vm1182_vm7 = vcmask 1045504  }
  0xfc   :  { %v4334_v14 = vpack.c.bf16 %v234_v13, %v233_v12  ;;  %v225_v15 = vld [vmem:[#allocation2 + $0x8] sm:$0xff]  ;;  %v4362_v28 = vand.u32 127, %v226_v26  ;;  %vm2156_vm8 = vcmask 1046528   ;;  %vm2152_vm9 = vcmask 56320   ;;  %s4909_s17 = sld [smem:[#allocation36_spill]]  ;;  %v2393_v29 = vld [vmem:[%s4882_s9 + $0x40] sm:$0xff] }
  0xfd   :  { %3297 = vmatpush3.bf16.msra.mxu0 %v4330_v11  ;;  %vm2506_vm10 = vcmask 130048  }
  0xfe   :  { %3298 = vmatprep.subr.bf16.mxu0 %v4035_v0  ;;  %vm228_vm2 = vcmp.ge.s32.totalorder %v4362_v28, 64  ;;  %vm229_vm3 = vcmp.lt.s32.totalorder %v4362_v28, 96  ;;  %vm2836_vm11 = vcmp.ge.s32.totalorder %v4362_v28, 3  ;;  %vm2837_vm12 = vcmp.lt.s32.totalorder %v4362_v28, 6 }
  0xff   :  { %vm4366_vm4 = vmand %vm228_vm2, %vm229_vm3  ;;  %vm2835_vm14 = vcmp.lt.s32.totalorder %v4362_v28, 3 }
 0x100   :  { %v235_v2 = vld [vmem:[%s4905_s27] sm:$0xff]  ;;  %v236_v3 = vld [vmem:[%s4905_s27 + $0x8] sm:$0xff]  ;;  %v237_v4 = vld [vmem:[%s4905_s27 + $0x10] sm:$0xff] }
 0x101   :  { %v3281_v5 = vpack.c.bf16 %v236_v3, %v235_v2  ;;  %v238_v6 = vld [vmem:[%s4905_s27 + $0x18] sm:$0xff]  ;;  %3300 = vmatpush3.bf16.msra.mxu0 %v4334_v14  ;;  %v2872_v16 = vld [vmem:[%s4906_s23] ss:$0 sm:$0xff]  ;;  %vm2838_vm13 = vmand %vm2836_vm11, %vm2837_vm12 }
 0x102   :  { %v3285_v8 = vpack.c.bf16 %v238_v6, %v237_v4  ;;  %3307 = vmatprep.subr.bf16.mxu0 %v4035_v0 }
 0x103   :  { %3282 = vmatprep.subr.bf16.mxu1 %v3281_v5 }
 0x104   :  { %3284 = vmatpush3.bf16.msra.mxu1 %v3281_v5 }
 0x105   :  { %3286 = vmatprep.subr.bf16.mxu1 %v3285_v8 }
 0x108   :  { %3288 = vmatpush3.bf16.msra.mxu1 %v3285_v8 }
 0x109   :  { %3289 = vmatprep.subr.bf16.mxu1 %v4035_v0 }
 0x10b   :  { %3092 = vmatmul.mubr.msk.f32.vlgmr.msra.gmra.mrb[0].mxu1 %vm246_vm1, %v225_v15 }
 0x10c   :  { %3291 = vmatpush3.bf16.msra.mxu1 %v4330_v11  ;;  %3102 = vmatprep.mubr.msk.f32.mxu1 %vm4036_vm0, %v4037_v1 }
 0x10d   :  { %3292 = vmatprep.subr.bf16.mxu1 %v4035_v0 }
 0x110   :  { %3294 = vmatpush3.bf16.msra.mxu1 %v4334_v14 }
 0x111   :  { %3301 = vmatprep.subr.bf16.mxu1 %v4035_v0 }
 0x113   :  { %3103 = vmatmul.mubr.f32.vlgmr.msra.gmra.mrb[2].mxu1 %v4037_v1 }
 0x114   :  { %3303 = vmatpush3.bf16.msra.mxu1 %v4330_v11  ;;  %3124 = vmatprep.mubr.msk.f32.mxu1 %vm4036_vm0, %v4037_v1 }
 0x115   :  { %3304 = vmatprep.subr.bf16.mxu1 %v4035_v0 }
 0x118   :  { %3306 = vmatpush3.bf16.msra.mxu1 %v4334_v14 }
 0x119   :  { %3313 = vmatprep.subr.bf16.mxu1 %v4035_v0 }
 0x1de   :  { %v3093_v17 = vpop.f32.mrb[0].mxu1 }
 0x1df   :  { %v4356_v18 = vadd.f32 %v3093_v17, %v2872_v16  ;;  %v319_v19 = vpop.f32.mrb[1].mxu1 }
 0x1e0   :  { %v4358_v20 = vadd.f32 %v2872_v16, %v319_v19 }
 0x1e6   :  { %v397_v21 = vpop.f32.mrb[2].mxu1 }
 0x1e7   :  { %v401_v22 = vadd.f32 %v397_v21, %v4358_v20  ;;  %v3104_v23 = vpop.f32.mrb[3].mxu1 }
 0x1e9   :  { %v2875_v24 = vmul.f32 -1.442695, %v401_v22 }
 0x1eb   :  { %3558 = vpow2.f32 %v2875_v24 }
 0x1ec   :  { %3560 = vtanh.f32 %v401_v22 }
 0x1f5   :  { %v3559_v25 = vpop.eup %3558 }
 0x1f6   :  { %v406_v27 = vadd.f32 1.0, %v3559_v25  ;;  %v3561_v30 = vpop.eup %3560 }
 0x1f8   :  { %3562 = vrcp.f32 %v406_v27 }
 0x202   :  { %v3563_v31 = vpop.eup %3562 }
 0x203   :  { %v409_v32 = vsel %vm4366_vm4, %v3561_v30, %v3563_v31 }
 0x204   :  { %412 = vrot.lane.b32.xlu0 %v409_v32, %s4038_s6  ;;  %v410_v35 = vmul.f32 0.0, %v409_v32 }
 0x276   :  { %v413_v33 = vpop.permute.xlu0 %412 }
 0x277   :  { %v415_v34 = vmul.f32 %v413_v33, %v409_v32 }
 0x279   :  { %417 = vrot.lane.b32.xlu0 %v415_v34, %s4039_s13 }
 0x2eb   :  { %v418_v36 = vpop.permute.xlu0 %417 }
 0x2ec   :  { %v420_v37 = vadd.f32 %v418_v36, %v410_v35 }
 0x2ee   :  { %3564 = vtanh.f32 %v420_v37  ;;  %v515_v54 = vrot.slane %v420_v37, 6 }
 0x2f8   :  { %v3565_v38 = vpop.eup %3564 }
 0x2f9   :  { %423 = vrot.lane.b32.xlu1 %v3565_v38, %s4038_s6 }
 0x36b   :  { %v424_v39 = vpop.permute.xlu1 %423 }
 0x36c   :  { %v4375_v40 = vmul.f32 %v424_v39, %v409_v32 }
 0x36e   :  { %428 = vrot.lane.b32.xlu1 %v4375_v40, %s4039_s13 }
 0x3e0   :  { %v429_v41 = vpop.permute.xlu1 %428 }
 0x3e1   :  { %3114 = vmatmul.mubr.msk.f32.vlgmr.msra.gmra.mrb[0].mxu0 %vm246_vm1, %v429_v41 }
 0x3e2   :  { %3309 = vmatpush3.bf16.msra.mxu0 %v4330_v11  ;;  %3135 = vmatprep.mubr.msk.f32.mxu0 %vm4036_vm0, %v4037_v1 }
 0x3e3   :  { %3310 = vmatprep.subr.bf16.mxu0 %v4035_v0 }
 0x3e6   :  { %3312 = vmatpush3.bf16.msra.mxu0 %v4334_v14 }
 0x3e7   :  { %3319 = vmatprep.subr.bf16.mxu0 %v4035_v0 }
 0x4b4   :  { %v498_v42 = vpop.f32.mrb[0].mxu0 }
 0x4b5   :  { %v503_v43 = vrot.slane %v498_v42, 6  ;;  %v3115_v44 = vpop.f32.mrb[1].mxu0 }
 0x4b7   :  { %v505_v45 = vadd.f32 %v503_v43, %v4358_v20 }
 0x4b9   :  { %v2877_v46 = vmul.f32 -1.442695, %v505_v45 }
 0x4bb   :  { %3566 = vpow2.f32 %v2877_v46 }
 0x4bc   :  { %3568 = vtanh.f32 %v505_v45 }
 0x4c5   :  { %v3567_v47 = vpop.eup %3566 }
 0x4c6   :  { %v510_v48 = vadd.f32 1.0, %v3567_v47  ;;  %v3569_v49 = vpop.eup %3568 }
 0x4c8   :  { %3570 = vrcp.f32 %v510_v48 }
 0x4d2   :  { %v3571_v50 = vpop.eup %3570 }
 0x4d3   :  { %v513_v51 = vsel %vm4366_vm4, %v3569_v49, %v3571_v50 }
 0x4d4   :  { %519 = vrot.lane.b32.xlu0 %v513_v51, %s4038_s6  ;;  %v517_v55 = vmul.f32 %v515_v54, %v513_v51 }
 0x546   :  { %v520_v52 = vpop.permute.xlu0 %519 }
 0x547   :  { %v522_v53 = vmul.f32 %v520_v52, %v513_v51 }
 0x549   :  { %524 = vrot.lane.b32.xlu1 %v522_v53, %s4039_s13 }
 0x5bb   :  { %v525_v56 = vpop.permute.xlu1 %524 }
 0x5bc   :  { %v527_v57 = vadd.f32 %v525_v56, %v517_v55 }
 0x5be   :  { %3572 = vtanh.f32 %v527_v57  ;;  %v623_v15 = vrot.slane %v527_v57, 6 }
 0x5c8   :  { %v3573_v58 = vpop.eup %3572 }
 0x5c9   :  { %530 = vrot.lane.b32.xlu0 %v3573_v58, %s4038_s6 }
 0x63b   :  { %v531_v59 = vpop.permute.xlu0 %530 }
 0x63c   :  { %v533_v60 = vmul.f32 %v531_v59, %v513_v51 }
 0x63e   :  { %v535_v61 = vrot.slane %v533_v60, 2  ;;  %v1179_v24 = vsel %vm1178_vm5, %v4375_v40, %v533_v60 }
 0x640   :  { %536 = vrot.lane.b32.xlu1 %v535_v61, %s4039_s13 }
 0x6b2   :  { %v537_v62 = vpop.permute.xlu1 %536 }
 0x6b3   :  { %3125 = vmatmul.mubr.msk.f32.vlgmr.msra.gmra.mrb[4].mxu1 %vm246_vm1, %v537_v62 }
 0x6b4   :  { %3315 = vmatpush3.bf16.msra.mxu1 %v4330_v11  ;;  %3146 = vmatprep.mubr.msk.f32.mxu1 %vm4036_vm0, %v4037_v1 }
 0x6b5   :  { %3316 = vmatprep.subr.bf16.mxu1 %v4035_v0 }
 0x6b8   :  { %3318 = vmatpush3.bf16.msra.mxu1 %v4334_v14 }
 0x6b9   :  { %3325 = vmatprep.subr.bf16.mxu1 %v4035_v0 }
 0x786   :  { %v606_v63 = vpop.f32.mrb[4].mxu1 }
 0x787   :  { %v611_v2 = vrot.slane %v606_v63, 4  ;;  %v3126_v3 = vpop.f32.mrb[5].mxu1 }
 0x789   :  { %v613_v4 = vadd.f32 %v611_v2, %v4358_v20 }
 0x78b   :  { %v2879_v5 = vmul.f32 -1.442695, %v613_v4 }
 0x78d   :  { %3574 = vpow2.f32 %v2879_v5 }
 0x78e   :  { %3576 = vtanh.f32 %v613_v4 }
 0x797   :  { %v3575_v6 = vpop.eup %3574 }
 0x798   :  { %v618_v7 = vadd.f32 1.0, %v3575_v6  ;;  %v3577_v8 = vpop.eup %3576 }
 0x79a   :  { %3578 = vrcp.f32 %v618_v7 }
 0x7a4   :  { %v3579_v9 = vpop.eup %3578 }
 0x7a5   :  { %v621_v10 = vsel %vm4366_vm4, %v3577_v8, %v3579_v9 }
 0x7a6   :  { %627 = vrot.lane.b32.xlu0 %v621_v10, %s4038_s6  ;;  %v625_v16 = vmul.f32 %v623_v15, %v621_v10 }
 0x818   :  { %v628_v12 = vpop.permute.xlu0 %627 }
 0x819   :  { %v630_v13 = vmul.f32 %v628_v12, %v621_v10 }
 0x81b   :  { %632 = vrot.lane.b32.xlu1 %v630_v13, %s4039_s13 }
 0x88d   :  { %v633_v17 = vpop.permute.xlu1 %632 }
 0x88e   :  { %v635_v19 = vadd.f32 %v633_v17, %v625_v16 }
 0x890   :  { %3580 = vtanh.f32 %v635_v19  ;;  %v731_v43 = vrot.slane %v635_v19, 6 }
 0x89a   :  { %v3581_v21 = vpop.eup %3580 }
 0x89b   :  { %638 = vrot.lane.b32.xlu0 %v3581_v21, %s4038_s6 }
 0x90d   :  { %v639_v22 = vpop.permute.xlu0 %638 }
 0x90e   :  { %v641_v23 = vmul.f32 %v639_v22, %v621_v10 }
 0x910   :  { %v643_v25 = vrot.slane %v641_v23, 4  ;;  %v1181_v27 = vsel %vm1180_vm6, %v1179_v24, %v641_v23 }
 0x912   :  { %644 = vrot.lane.b32.xlu1 %v643_v25, %s4039_s13 }
 0x984   :  { %v645_v30 = vpop.permute.xlu1 %644 }
 0x985   :  { %3136 = vmatmul.mubr.msk.f32.vlgmr.msra.gmra.mrb[2].mxu0 %vm246_vm1, %v645_v30 }
 0x986   :  { %3321 = vmatpush3.bf16.msra.mxu0 %v4330_v11  ;;  %3157 = vmatprep.mubr.msk.f32.mxu0 %vm4036_vm0, %v4037_v1 }
 0x987   :  { %3322 = vmatprep.subr.bf16.mxu0 %v4035_v0 }
 0x98a   :  { %3324 = vmatpush3.bf16.msra.mxu0 %v4334_v14 }
 0x98b   :  { %3331 = vmatprep.subr.bf16.mxu0 %v4035_v0 }
 0xa58   :  { %v714_v31 = vpop.f32.mrb[2].mxu0 }
 0xa59   :  { %v719_v32 = vrot.slane %v714_v31, 2  ;;  %v3137_v33 = vpop.f32.mrb[3].mxu0 }
 0xa5b   :  { %v721_v34 = vadd.f32 %v719_v32, %v4358_v20 }
 0xa5d   :  { %v2881_v35 = vmul.f32 -1.442695, %v721_v34 }
 0xa5f   :  { %3582 = vpow2.f32 %v2881_v35 }
 0xa60   :  { %3584 = vtanh.f32 %v721_v34 }
 0xa69   :  { %v3583_v36 = vpop.eup %3582 }
 0xa6a   :  { %v726_v37 = vadd.f32 1.0, %v3583_v36  ;;  %v3585_v38 = vpop.eup %3584 }
 0xa6c   :  { %3586 = vrcp.f32 %v726_v37 }
 0xa76   :  { %v3587_v39 = vpop.eup %3586 }
 0xa77   :  { %v729_v40 = vsel %vm4366_vm4, %v3585_v38, %v3587_v39 }
 0xa78   :  { %735 = vrot.lane.b32.xlu0 %v729_v40, %s4038_s6  ;;  %v733_v44 = vmul.f32 %v731_v43, %v729_v40 }
 0xaea   :  { %v736_v41 = vpop.permute.xlu0 %735 }
 0xaeb   :  { %v738_v42 = vmul.f32 %v736_v41, %v729_v40 }
 0xaed   :  { %740 = vrot.lane.b32.xlu1 %v738_v42, %s4039_s13 }
 0xb5f   :  { %v741_v20 = vpop.permute.xlu1 %740 }
 0xb60   :  { %v743_v45 = vadd.f32 %v741_v20, %v733_v44 }
 0xb62   :  { %3588 = vtanh.f32 %v743_v45  ;;  %v836_v63 = vrot.slane %v743_v45, 6 }
 0xb6c   :  { %v3589_v46 = vpop.eup %3588 }
 0xb6d   :  { %746 = vrot.lane.b32.xlu0 %v3589_v46, %s4038_s6 }
 0xbdf   :  { %v747_v47 = vpop.permute.xlu0 %746 }
 0xbe0   :  { %v749_v48 = vmul.f32 %v747_v47, %v729_v40 }
 0xbe2   :  { %v751_v49 = vrot.slane %v749_v48, 6  ;;  %v4424_v50 = vsel %vm1182_vm7, %v1181_v27, %v749_v48 }
 0xbe4   :  { %752 = vrot.lane.b32.xlu1 %v751_v49, %s4039_s13 }
 0xc56   :  { %v753_v51 = vpop.permute.xlu1 %752 }
 0xc57   :  { %3147 = vmatmul.mubr.msk.f32.vlgmr.msra.gmra.mrb[6].mxu1 %vm246_vm1, %v753_v51 }
 0xc58   :  { %3327 = vmatpush3.bf16.msra.mxu1 %v4330_v11  ;;  %3168 = vmatprep.mubr.msk.f32.mxu1 %vm4036_vm0, %v4037_v1 }
 0xc59   :  { %3328 = vmatprep.subr.bf16.mxu1 %v4035_v0 }
 0xc5c   :  { %3330 = vmatpush3.bf16.msra.mxu1 %v4334_v14 }
 0xd2a   :  { %v822_v52 = vpop.f32.mrb[6].mxu1 }
 0xd2b   :  { %v826_v53 = vadd.f32 %v822_v52, %v4356_v18  ;;  %v3148_v54 = vpop.f32.mrb[7].mxu1 }
 0xd2d   :  { %v2883_v55 = vmul.f32 -1.442695, %v826_v53 }
 0xd2f   :  { %3590 = vpow2.f32 %v2883_v55 }
 0xd30   :  { %3592 = vtanh.f32 %v826_v53 }
 0xd39   :  { %v3591_v56 = vpop.eup %3590 }
 0xd3a   :  { %v831_v57 = vadd.f32 1.0, %v3591_v56  ;;  %v3593_v58 = vpop.eup %3592 }
 0xd3c   :  { %3594 = vrcp.f32 %v831_v57 }
 0xd46   :  { %v3595_v59 = vpop.eup %3594 }
 0xd47   :  { %v834_v60 = vsel %vm4366_vm4, %v3593_v58, %v3595_v59 }
 0xd48   :  { %840 = vrot.lane.b32.xlu0 %v834_v60, %s4038_s6  ;;  %v838_v2 = vmul.f32 %v836_v63, %v834_v60 }
 0xdba   :  { %v841_v61 = vpop.permute.xlu0 %840 }
 0xdbb   :  { %v843_v62 = vmul.f32 %v841_v61, %v834_v60 }
 0xdbd   :  { %845 = vrot.lane.b32.xlu1 %v843_v62, %s4039_s13 }
 0xe2f   :  { %v846_v3 = vpop.permute.xlu1 %845 }
 0xe30   :  { %v848_v4 = vadd.f32 %v846_v3, %v838_v2 }
 0xe32   :  { %3596 = vtanh.f32 %v848_v4  ;;  %v943_v23 = vrot.slane %v848_v4, 6 }
 0xe3c   :  { %v3597_v5 = vpop.eup %3596 }
 0xe3d   :  { %851 = vrot.lane.b32.xlu0 %v3597_v5, %s4038_s6 }
 0xeaf   :  { %v852_v6 = vpop.permute.xlu0 %851 }
 0xeb0   :  { %v4439_v7 = vmul.f32 %v852_v6, %v834_v60 }
 0xeb2   :  { %856 = vrot.lane.b32.xlu1 %v4439_v7, %s4039_s13 }
 0xf24   :  { %v857_v8 = vpop.permute.xlu1 %856 }
 0xf25   :  { %3158 = vmatmul.mubr.msk.f32.vlgmr.msra.gmra.mrb[4].mxu0 %vm246_vm1, %v857_v8 }
 0xf26   :  { %3333 = vmatpush3.bf16.msra.mxu0 %v4330_v11  ;;  %3179 = vmatprep.mubr.msk.f32.mxu0 %vm4036_vm0, %v4037_v1 }
 0xf27   :  { %3334 = vmatprep.subr.bf16.mxu0 %v4035_v0 }
 0xf2a   :  { %3336 = vmatpush3.bf16.msra.mxu0 %v4334_v14 }
 0xf2b   :  { %3345 = vmatprep.subr.bf16.mxu0 %v4035_v0 }
 0xff8   :  { %v926_v9 = vpop.f32.mrb[4].mxu0 }
 0xff9   :  { %v931_v10 = vrot.slane %v926_v9, 6  ;;  %v3159_v12 = vpop.f32.mrb[5].mxu0 }
 0xffb   :  { %v933_v13 = vadd.f32 %v931_v10, %v4356_v18 }
 0xffd   :  { %v2885_v15 = vmul.f32 -1.442695, %v933_v13 }
 0xfff   :  { %3598 = vpow2.f32 %v2885_v15  ;;  %v2891_v15 = vld [vmem:[%s4905_s27 + $0x28] sm:$0xff] }
0x1000   :  { %3600 = vtanh.f32 %v933_v13  ;;  %v2890_v13 = vld [vmem:[%s4905_s27 + $0x20] sm:$0xff] }
0x1009   :  { %v3599_v16 = vpop.eup %3598 }
0x100a   :  { %v938_v17 = vadd.f32 1.0, %v3599_v16  ;;  %v3601_v11 = vpop.eup %3600  ;;  %v1188_v16 = vld [vmem:[#allocation5 + $0x20] sm:$0xff] }
0x100c   :  { %3602 = vrcp.f32 %v938_v17  ;;  %v3337_v17 = vpack.c.bf16 %v2891_v15, %v2890_v13 }
0x100e   :  { %3338 = vmatprep.subr.bf16.mxu1 %v3337_v17 }
0x1016   :  { %v3603_v19 = vpop.eup %3602 }
0x1017   :  { %v941_v21 = vsel %vm4366_vm4, %v3601_v11, %v3603_v19  ;;  %v1189_v11 = vld [vmem:[#allocation5 + $0x28] sm:$0xff] }
0x1018   :  { %947 = vrot.lane.b32.xlu0 %v941_v21, %s4038_s6  ;;  %v945_v24 = vmul.f32 %v943_v23, %v941_v21  ;;  %v2893_v19 = vld [vmem:[%s4905_s27 + $0x38] sm:$0xff]  ;;  %v1191_v23 = vld [vmem:[#allocation5 + $0x38] sm:$0xff] }
0x108a   :  { %v948_v14 = vpop.permute.xlu0 %947 }
0x108b   :  { %v950_v22 = vmul.f32 %v948_v14, %v941_v21 }
0x108d   :  { %952 = vrot.lane.b32.xlu1 %v950_v22, %s4039_s13  ;;  %v1190_v22 = vld [vmem:[#allocation5 + $0x30] sm:$0xff] }
0x10ff   :  { %v953_v25 = vpop.permute.xlu1 %952 }
0x1100   :  { %v955_v27 = vadd.f32 %v953_v25, %v945_v24  ;;  %v4494_v24 = vpack.c.bf16 %v1191_v23, %v1190_v22 }
0x1102   :  { %3604 = vtanh.f32 %v955_v27  ;;  %v1051_v46 = vrot.slane %v955_v27, 6 }
0x110c   :  { %v3605_v30 = vpop.eup %3604 }
0x110d   :  { %958 = vrot.lane.b32.xlu0 %v3605_v30, %s4038_s6 }
0x117f   :  { %v959_v31 = vpop.permute.xlu0 %958 }
0x1180   :  { %v961_v32 = vmul.f32 %v959_v31, %v941_v21  ;;  %v4491_v21 = vpack.c.bf16 %v1189_v11, %v1188_v16 }
0x1182   :  { %v963_v33 = vrot.slane %v961_v32, 2  ;;  %v1184_v54 = vsel %vm1178_vm5, %v4439_v7, %v961_v32 }
0x1184   :  { %964 = vrot.lane.b32.xlu1 %v963_v33, %s4039_s13 }
0x11f6   :  { %v965_v34 = vpop.permute.xlu1 %964 }
0x11f7   :  { %3169 = vmatmul.mubr.msk.f32.vlgmr.msra.gmra.mrb[8].mxu1 %vm246_vm1, %v965_v34 }
0x11f8   :  { %3340 = vmatpush3.bf16.msra.mxu1 %v3337_v17 }
0x12ca   :  { %v1034_v35 = vpop.f32.mrb[8].mxu1 }
0x12cb   :  { %v1039_v36 = vrot.slane %v1034_v35, 4  ;;  %v3170_v37 = vpop.f32.mrb[9].mxu1  ;;  %v2895_v35 = vld [vmem:[%s4906_s23 + $0x1] ss:$0 sm:$0xff] }
0x12cd   :  { %v1041_v38 = vadd.f32 %v1039_v36, %v4356_v18 }
0x12cf   :  { %v2887_v39 = vmul.f32 -1.442695, %v1041_v38 }
0x12d1   :  { %3606 = vpow2.f32 %v2887_v39 }
0x12d2   :  { %3608 = vtanh.f32 %v1041_v38 }
0x12db   :  { %v3607_v40 = vpop.eup %3606 }
0x12dc   :  { %v1046_v41 = vadd.f32 1.0, %v3607_v40  ;;  %v3609_v42 = vpop.eup %3608 }
0x12de   :  { %3610 = vrcp.f32 %v1046_v41 }
0x12e8   :  { %v3611_v43 = vpop.eup %3610 }
0x12e9   :  { %v1049_v44 = vsel %vm4366_vm4, %v3609_v42, %v3611_v43 }
0x12ea   :  { %1055 = vrot.lane.b32.xlu0 %v1049_v44, %s4038_s6  ;;  %v1053_v47 = vmul.f32 %v1051_v46, %v1049_v44 }
0x135c   :  { %v1056_v20 = vpop.permute.xlu0 %1055 }
0x135d   :  { %v1058_v45 = vmul.f32 %v1056_v20, %v1049_v44 }
0x135f   :  { %1060 = vrot.lane.b32.xlu1 %v1058_v45, %s4039_s13 }
0x13d1   :  { %v1061_v48 = vpop.permute.xlu1 %1060 }
0x13d2   :  { %v1063_v49 = vadd.f32 %v1061_v48, %v1053_v47 }
0x13d4   :  { %3612 = vtanh.f32 %v1063_v49 }
0x13de   :  { %v3613_v51 = vpop.eup %3612 }
0x13df   :  { %1066 = vrot.lane.b32.xlu0 %v3613_v51, %s4038_s6 }
0x1451   :  { %v1067_v52 = vpop.permute.xlu0 %1066 }
0x1452   :  { %v1069_v53 = vmul.f32 %v1067_v52, %v1049_v44 }
0x1454   :  { %v1071_v55 = vrot.slane %v1069_v53, 4  ;;  %v1185_v56 = vsel %vm1180_vm6, %v1184_v54, %v1069_v53 }
0x1456   :  { %1072 = vrot.lane.b32.xlu1 %v1071_v55, %s4039_s13 }
0x14c8   :  { %v1073_v57 = vpop.permute.xlu1 %1072 }
0x14c9   :  { %3180 = vmatmul.mubr.msk.f32.vlgmr.msra.gmra.mrb[6].mxu0 %vm246_vm1, %v1073_v57 }
0x14ca   :  { %3201 = vmatprep.mubr.msk.f32.mxu0 %vm4036_vm0, %v4037_v1  ;;  %3347 = vmatpush3.bf16.msra.mxu0 %v4491_v21 }
0x14cb   :  { %3348 = vmatprep.subr.bf16.mxu0 %v4035_v0 }
0x14ce   :  { %3350 = vmatpush3.bf16.msra.mxu0 %v4494_v24 }
0x14cf   :  { %3357 = vmatprep.subr.bf16.mxu0 %v4035_v0 }
0x14d1   :  { %3202 = vmatmul.mubr.f32.vlgmr.msra.gmra.mrb[8].mxu0 %v4037_v1 }
0x14d2   :  { %3359 = vmatpush3.bf16.msra.mxu0 %v4491_v21  ;;  %3223 = vmatprep.mubr.msk.f32.mxu0 %vm4036_vm0, %v4037_v1 }
0x14d3   :  { %3360 = vmatprep.subr.bf16.mxu0 %v4035_v0 }
0x14d6   :  { %3362 = vmatpush3.bf16.msra.mxu0 %v4494_v24 }
0x14d7   :  { %3369 = vmatprep.subr.bf16.mxu0 %v4035_v0 }
0x159c   :  { %v1142_v58 = vpop.f32.mrb[6].mxu0 }
0x159d   :  { %v1147_v59 = vrot.slane %v1142_v58, 2  ;;  %v3181_v60 = vpop.f32.mrb[7].mxu0 }
0x159f   :  { %v1149_v61 = vadd.f32 %v1147_v59, %v4356_v18  ;;  %v1159_v18 = vrot.slane %v1063_v49, 6 }
0x15a1   :  { %v2889_v62 = vmul.f32 -1.442695, %v1149_v61 }
0x15a3   :  { %3614 = vpow2.f32 %v2889_v62 }
0x15a4   :  { %3616 = vtanh.f32 %v1149_v61  ;;  %v1356_v33 = vpop.f32.mrb[8].mxu0 }
0x15a5   :  { %v3203_v34 = vpop.f32.mrb[9].mxu0 }
0x15ad   :  { %v3615_v63 = vpop.eup %3614 }
0x15ae   :  { %v1154_v2 = vadd.f32 1.0, %v3615_v63  ;;  %v3617_v3 = vpop.eup %3616 }
0x15b0   :  { %3618 = vrcp.f32 %v1154_v2 }
0x15ba   :  { %v3619_v4 = vpop.eup %3618 }
0x15bb   :  { %v1157_v5 = vsel %vm4366_vm4, %v3617_v3, %v3619_v4 }
0x15bc   :  { %1163 = vrot.lane.b32.xlu0 %v1157_v5, %s4038_s6  ;;  %v1161_v8 = vmul.f32 %v1159_v18, %v1157_v5 }
0x162e   :  { %v1164_v6 = vpop.permute.xlu0 %1163 }
0x162f   :  { %v1166_v7 = vmul.f32 %v1164_v6, %v1157_v5 }
0x1631   :  { %1168 = vrot.lane.b32.xlu1 %v1166_v7, %s4039_s13 }
0x1635   :  { %1207 = vrot.lane.b32.xlu1 %v4424_v50, %s4039_s13  ;;  %v2892_v50 = vld [vmem:[%s4905_s27 + $0x30] sm:$0xff] }
0x1636   :  { %v3341_v14 = vpack.c.bf16 %v2893_v19, %v2892_v50 }
0x1638   :  { %3342 = vmatprep.subr.bf16.mxu1 %v3341_v14 }
0x1639   :  { %3344 = vmatpush3.bf16.msra.mxu1 %v3341_v14 }
0x163a   :  { %3351 = vmatprep.subr.bf16.mxu1 %v4035_v0 }
0x16a3   :  { %v1169_v9 = vpop.permute.xlu1 %1168 }
0x16a4   :  { %v1171_v10 = vadd.f32 %v1169_v9, %v1161_v8 }
0x16a6   :  { %3620 = vtanh.f32 %v1171_v10 }
0x16a7   :  { %v1208_v12 = vpop.permute.xlu1 %1207 }
0x16a8   :  { %3190 = vmatprep.mubr.msk.f32.mxu1 %vm246_vm1, %v1208_v12 }
0x16b0   :  { %v3621_v25 = vpop.eup %3620 }
0x16b1   :  { %1174 = vrot.lane.b32.xlu0 %v3621_v25, %s4038_s6 }
0x1723   :  { %v1175_v27 = vpop.permute.xlu0 %1174 }
0x1724   :  { %v1177_v30 = vmul.f32 %v1175_v27, %v1157_v5 }
0x1726   :  { %v1186_v31 = vsel %vm1182_vm7, %v1185_v56, %v1177_v30 }
0x1727   :  { %1209 = vrot.lane.b32.xlu0 %v1186_v31, %s4039_s13 }
0x1799   :  { %v1210_v32 = vpop.permute.xlu0 %1209 }
0x179a   :  { %3191 = vmatmul.mubr.msk.f32.vlgmr.msra.gmra.mrb[10].mxu1 %vm246_vm1, %v1210_v32 }
0x179b   :  { %3353 = vmatpush3.bf16.msra.mxu1 %v4491_v21  ;;  %3212 = vmatprep.mubr.msk.f32.mxu1 %vm4036_vm0, %v4037_v1 }
0x179c   :  { %3354 = vmatprep.subr.bf16.mxu1 %v4035_v0 }
0x179f   :  { %3356 = vmatpush3.bf16.msra.mxu1 %v4494_v24 }
0x17a0   :  { %3363 = vmatprep.subr.bf16.mxu1 %v4035_v0 }
0x186d   :  { %v3192_v36 = vpop.f32.mrb[10].mxu1 }
0x186e   :  { %v4520_v37 = vadd.f32 %v3192_v36, %v2895_v35  ;;  %v1281_v38 = vpop.f32.mrb[11].mxu1 }
0x186f   :  { %v4522_v39 = vadd.f32 %v2895_v35, %v1281_v38 }
0x1871   :  { %v1360_v40 = vadd.f32 %v1356_v33, %v4522_v39 }
0x1873   :  { %v2898_v41 = vmul.f32 -1.442695, %v1360_v40 }
0x1875   :  { %3622 = vpow2.f32 %v2898_v41 }
0x1876   :  { %3624 = vtanh.f32 %v1360_v40 }
0x187f   :  { %v3623_v42 = vpop.eup %3622 }
0x1880   :  { %v1365_v43 = vadd.f32 1.0, %v3623_v42  ;;  %v3625_v44 = vpop.eup %3624 }
0x1882   :  { %3626 = vrcp.f32 %v1365_v43 }
0x188c   :  { %v3627_v20 = vpop.eup %3626 }
0x188d   :  { %v1368_v45 = vsel %vm4366_vm4, %v3625_v44, %v3627_v20 }
0x188e   :  { %1371 = vrot.lane.b32.xlu1 %v1368_v45, %s4038_s6  ;;  %v1369_v48 = vmul.f32 0.0, %v1368_v45 }
0x1900   :  { %v1372_v46 = vpop.permute.xlu1 %1371 }
0x1901   :  { %v1374_v47 = vmul.f32 %v1372_v46, %v1368_v45 }
0x1903   :  { %1376 = vrot.lane.b32.xlu0 %v1374_v47, %s4039_s13 }
0x1975   :  { %v1377_v49 = vpop.permute.xlu0 %1376 }
0x1976   :  { %v1379_v51 = vadd.f32 %v1377_v49, %v1369_v48 }
0x1978   :  { %3628 = vtanh.f32 %v1379_v51  ;;  %v1474_v6 = vrot.slane %v1379_v51, 6 }
0x1982   :  { %v3629_v52 = vpop.eup %3628 }
0x1983   :  { %1382 = vrot.lane.b32.xlu1 %v3629_v52, %s4038_s6 }
0x19f5   :  { %v1383_v53 = vpop.permute.xlu1 %1382 }
0x19f6   :  { %v1385_v54 = vmul.f32 %v1383_v53, %v1368_v45 }
0x19f8   :  { %1387 = vrot.lane.b32.xlu0 %v1385_v54, %s4039_s13 }
0x1a6a   :  { %v1388_v55 = vpop.permute.xlu0 %1387 }
0x1a6b   :  { %3213 = vmatmul.mubr.msk.f32.vlgmr.msra.gmra.mrb[12].mxu1 %vm246_vm1, %v1388_v55 }
0x1a6c   :  { %3365 = vmatpush3.bf16.msra.mxu1 %v4491_v21  ;;  %3234 = vmatprep.mubr.msk.f32.mxu1 %vm4036_vm0, %v4037_v1 }
0x1a6d   :  { %3366 = vmatprep.subr.bf16.mxu1 %v4035_v0 }
0x1a70   :  { %3368 = vmatpush3.bf16.msra.mxu1 %v4494_v24 }
0x1a71   :  { %3375 = vmatprep.subr.bf16.mxu1 %v4035_v0 }
0x1b3e   :  { %v1457_v56 = vpop.f32.mrb[12].mxu1 }
0x1b3f   :  { %v1462_v57 = vrot.slane %v1457_v56, 6  ;;  %v3214_v58 = vpop.f32.mrb[13].mxu1 }
0x1b41   :  { %v1464_v59 = vadd.f32 %v1462_v57, %v4522_v39 }
0x1b43   :  { %v2900_v60 = vmul.f32 -1.442695, %v1464_v59 }
0x1b45   :  { %3630 = vpow2.f32 %v2900_v60 }
0x1b46   :  { %3632 = vtanh.f32 %v1464_v59 }
0x1b4f   :  { %v3631_v61 = vpop.eup %3630 }
0x1b50   :  { %v1469_v62 = vadd.f32 1.0, %v3631_v61  ;;  %v3633_v63 = vpop.eup %3632 }
0x1b52   :  { %3634 = vrcp.f32 %v1469_v62 }
0x1b5c   :  { %v3635_v2 = vpop.eup %3634 }
0x1b5d   :  { %v1472_v3 = vsel %vm4366_vm4, %v3633_v63, %v3635_v2 }
0x1b5e   :  { %1478 = vrot.lane.b32.xlu1 %v1472_v3, %s4038_s6  ;;  %v1476_v7 = vmul.f32 %v1474_v6, %v1472_v3 }
0x1bd0   :  { %v1479_v4 = vpop.permute.xlu1 %1478 }
0x1bd1   :  { %v1481_v5 = vmul.f32 %v1479_v4, %v1472_v3 }
0x1bd3   :  { %1483 = vrot.lane.b32.xlu0 %v1481_v5, %s4039_s13 }
0x1c45   :  { %v1484_v18 = vpop.permute.xlu0 %1483 }
0x1c46   :  { %v1486_v8 = vadd.f32 %v1484_v18, %v1476_v7 }
0x1c48   :  { %3636 = vtanh.f32 %v1486_v8  ;;  %v1582_v32 = vrot.slane %v1486_v8, 6 }
0x1c52   :  { %v3637_v9 = vpop.eup %3636 }
0x1c53   :  { %1489 = vrot.lane.b32.xlu1 %v3637_v9, %s4038_s6 }
0x1cc5   :  { %v1490_v10 = vpop.permute.xlu1 %1489 }
0x1cc6   :  { %v1492_v12 = vmul.f32 %v1490_v10, %v1472_v3 }
0x1cc8   :  { %v1494_v13 = vrot.slane %v1492_v12, 2 }
0x1cca   :  { %1495 = vrot.lane.b32.xlu0 %v1494_v13, %s4039_s13 }
0x1d3c   :  { %v1496_v15 = vpop.permute.xlu0 %1495 }
0x1d3d   :  { %3224 = vmatmul.mubr.msk.f32.vlgmr.msra.gmra.mrb[10].mxu0 %vm246_vm1, %v1496_v15 }
0x1d3e   :  { %3371 = vmatpush3.bf16.msra.mxu0 %v4491_v21  ;;  %3245 = vmatprep.mubr.msk.f32.mxu0 %vm4036_vm0, %v4037_v1 }
0x1d3f   :  { %3372 = vmatprep.subr.bf16.mxu0 %v4035_v0 }
0x1d42   :  { %3374 = vmatpush3.bf16.msra.mxu0 %v4494_v24 }
0x1d43   :  { %3381 = vmatprep.subr.bf16.mxu0 %v4035_v0 }
0x1e10   :  { %v1565_v16 = vpop.f32.mrb[10].mxu0 }
0x1e11   :  { %v1570_v17 = vrot.slane %v1565_v16, 4  ;;  %v3225_v11 = vpop.f32.mrb[11].mxu0 }
0x1e13   :  { %v1572_v50 = vadd.f32 %v1570_v17, %v4522_v39 }
0x1e15   :  { %v2902_v19 = vmul.f32 -1.442695, %v1572_v50 }
0x1e17   :  { %3638 = vpow2.f32 %v2902_v19 }
0x1e18   :  { %3640 = vtanh.f32 %v1572_v50 }
0x1e21   :  { %v3639_v14 = vpop.eup %3638 }
0x1e22   :  { %v1577_v22 = vadd.f32 1.0, %v3639_v14  ;;  %v3641_v23 = vpop.eup %3640 }
0x1e24   :  { %3642 = vrcp.f32 %v1577_v22 }
0x1e2e   :  { %v3643_v25 = vpop.eup %3642 }
0x1e2f   :  { %v1580_v27 = vsel %vm4366_vm4, %v3641_v23, %v3643_v25 }
0x1e30   :  { %1586 = vrot.lane.b32.xlu1 %v1580_v27, %s4038_s6  ;;  %v1584_v33 = vmul.f32 %v1582_v32, %v1580_v27 }
0x1ea2   :  { %v1587_v30 = vpop.permute.xlu1 %1586 }
0x1ea3   :  { %v1589_v31 = vmul.f32 %v1587_v30, %v1580_v27 }
0x1ea5   :  { %1591 = vrot.lane.b32.xlu0 %v1589_v31, %s4039_s13 }
0x1f17   :  { %v1592_v34 = vpop.permute.xlu0 %1591 }
0x1f18   :  { %v1594_v35 = vadd.f32 %v1592_v34, %v1584_v33 }
0x1f1a   :  { %3644 = vtanh.f32 %v1594_v35  ;;  %v1690_v55 = vrot.slane %v1594_v35, 6 }
0x1f24   :  { %v3645_v36 = vpop.eup %3644 }
0x1f25   :  { %1597 = vrot.lane.b32.xlu1 %v3645_v36, %s4038_s6 }
0x1f97   :  { %v1598_v38 = vpop.permute.xlu1 %1597 }
0x1f98   :  { %v1600_v40 = vmul.f32 %v1598_v38, %v1580_v27 }
0x1f9a   :  { %v1602_v41 = vrot.slane %v1600_v40, 4 }
0x1f9c   :  { %1603 = vrot.lane.b32.xlu0 %v1602_v41, %s4039_s13 }
0x200e   :  { %v1604_v42 = vpop.permute.xlu0 %1603 }
0x200f   :  { %3235 = vmatmul.mubr.msk.f32.vlgmr.msra.gmra.mrb[14].mxu1 %vm246_vm1, %v1604_v42 }
0x2010   :  { %3377 = vmatpush3.bf16.msra.mxu1 %v4491_v21  ;;  %3256 = vmatprep.mubr.msk.f32.mxu1 %vm4036_vm0, %v4037_v1 }
0x2011   :  { %3378 = vmatprep.subr.bf16.mxu1 %v4035_v0 }
0x2014   :  { %3380 = vmatpush3.bf16.msra.mxu1 %v4494_v24 }
0x2015   :  { %3387 = vmatprep.subr.bf16.mxu1 %v4035_v0 }
0x20e2   :  { %v1673_v43 = vpop.f32.mrb[14].mxu1 }
0x20e3   :  { %v1678_v44 = vrot.slane %v1673_v43, 2  ;;  %v3236_v20 = vpop.f32.mrb[15].mxu1 }
0x20e5   :  { %v1680_v45 = vadd.f32 %v1678_v44, %v4522_v39 }
0x20e7   :  { %v2904_v46 = vmul.f32 -1.442695, %v1680_v45 }
0x20e9   :  { %3646 = vpow2.f32 %v2904_v46 }
0x20ea   :  { %3648 = vtanh.f32 %v1680_v45 }
0x20f3   :  { %v3647_v47 = vpop.eup %3646 }
0x20f4   :  { %v1685_v48 = vadd.f32 1.0, %v3647_v47  ;;  %v3649_v49 = vpop.eup %3648 }
0x20f6   :  { %3650 = vrcp.f32 %v1685_v48 }
0x2100   :  { %v3651_v51 = vpop.eup %3650 }
0x2101   :  { %v1688_v52 = vsel %vm4366_vm4, %v3649_v49, %v3651_v51 }
0x2102   :  { %1694 = vrot.lane.b32.xlu1 %v1688_v52, %s4038_s6  ;;  %v1692_v56 = vmul.f32 %v1690_v55, %v1688_v52 }
0x2174   :  { %v1695_v53 = vpop.permute.xlu1 %1694 }
0x2175   :  { %v1697_v54 = vmul.f32 %v1695_v53, %v1688_v52 }
0x2177   :  { %1699 = vrot.lane.b32.xlu0 %v1697_v54, %s4039_s13 }
0x21e9   :  { %v1700_v39 = vpop.permute.xlu0 %1699 }
0x21ea   :  { %v1702_v57 = vadd.f32 %v1700_v39, %v1692_v56 }
0x21ec   :  { %3652 = vtanh.f32 %v1702_v57  ;;  %v1795_v12 = vrot.slane %v1702_v57, 6 }
0x21f6   :  { %v3653_v58 = vpop.eup %3652 }
0x21f7   :  { %1705 = vrot.lane.b32.xlu1 %v3653_v58, %s4038_s6 }
0x2269   :  { %v1706_v59 = vpop.permute.xlu1 %1705 }
0x226a   :  { %v1708_v60 = vmul.f32 %v1706_v59, %v1688_v52 }
0x226c   :  { %v1710_v61 = vrot.slane %v1708_v60, 6 }
0x226e   :  { %1711 = vrot.lane.b32.xlu0 %v1710_v61, %s4039_s13  ;;  %v2139_v61 = vld [vmem:[#allocation7 + $0x8] sm:$0x7f] }
0x22e0   :  { %v1712_v62 = vpop.permute.xlu0 %1711 }
0x22e1   :  { %3246 = vmatmul.mubr.msk.f32.vlgmr.msra.gmra.mrb[12].mxu0 %vm246_vm1, %v1712_v62  ;;  %v2138_v62 = vld [vmem:[#allocation7] sm:$0x7f] }
0x22e2   :  { %3383 = vmatpush3.bf16.msra.mxu0 %v4491_v21  ;;  %3267 = vmatprep.mubr.msk.f32.mxu0 %vm4036_vm0, %v4037_v1 }
0x22e3   :  { %3384 = vmatprep.subr.bf16.mxu0 %v4035_v0 }
0x22e6   :  { %3386 = vmatpush3.bf16.msra.mxu0 %v4494_v24 }
0x22e7   :  { %2913 = vmatprep.subr.msk.mxu0 %vm2156_vm8, %v2139_v61  ;;  %v2268_v61 = vld [vmem:[#allocation10 + $0x100] sm:$0xff] }
0x23b4   :  { %v1781_v63 = vpop.f32.mrb[12].mxu0 }
0x23b5   :  { %v1785_v2 = vadd.f32 %v1781_v63, %v4520_v37  ;;  %v3247_v3 = vpop.f32.mrb[13].mxu0  ;;  %v2137_v63 = vld [vmem:[%s4909_s17] sm:$0x3] }
0x23b6   :  { %v2239_v3 = vld [vmem:[#allocation10 + $0x18] sm:$0xff] }
0x23b7   :  { %v2906_v4 = vmul.f32 -1.442695, %v1785_v2 }
0x23b9   :  { %3654 = vpow2.f32 %v2906_v4 }
0x23ba   :  { %3656 = vtanh.f32 %v1785_v2  ;;  %v2237_v2 = vld [vmem:[#allocation10 + $0x8] sm:$0xff] }
0x23bb   :  { %v3393_v4 = vpack.c.bf16 %v2239_v3, %v2237_v2  ;;  %v2273_v2 = vld [vmem:[#allocation10 + $0x128] sm:$0xff]  ;;  %v2275_v3 = vld [vmem:[#allocation10 + $0x138] sm:$0xff] }
0x23c3   :  { %v3655_v5 = vpop.eup %3654 }
0x23c4   :  { %v1790_v6 = vadd.f32 1.0, %v3655_v5  ;;  %v3657_v7 = vpop.eup %3656 }
0x23c6   :  { %3658 = vrcp.f32 %v1790_v6 }
0x23d0   :  { %v3659_v18 = vpop.eup %3658 }
0x23d1   :  { %v1793_v8 = vsel %vm4366_vm4, %v3657_v7, %v3659_v18 }
0x23d2   :  { %1799 = vrot.lane.b32.xlu1 %v1793_v8, %s4038_s6  ;;  %v1797_v13 = vmul.f32 %v1795_v12, %v1793_v8  ;;  %v2241_v12 = vld [vmem:[#allocation10 + $0x28] sm:$0xff] }
0x2444   :  { %v1800_v9 = vpop.permute.xlu1 %1799 }
0x2445   :  { %v1802_v10 = vmul.f32 %v1800_v9, %v1793_v8  ;;  %v2238_v9 = vld [vmem:[#allocation10 + $0x10] sm:$0xff] }
0x2447   :  { %1804 = vrot.lane.b32.xlu0 %v1802_v10, %s4039_s13 }
0x24b9   :  { %v1805_v15 = vpop.permute.xlu0 %1804 }
0x24ba   :  { %v1807_v16 = vadd.f32 %v1805_v15, %v1797_v13  ;;  %v2243_v13 = vld [vmem:[#allocation10 + $0x38] sm:$0xff] }
0x24bb   :  { %v3397_v15 = vpack.c.bf16 %v2243_v13, %v2241_v12 }
0x24bc   :  { %3660 = vtanh.f32 %v1807_v16  ;;  %v1902_v34 = vrot.slane %v1807_v16, 6  ;;  %v2240_v16 = vld [vmem:[#allocation10 + $0x20] sm:$0xff] }
0x24c6   :  { %v3661_v17 = vpop.eup %3660 }
0x24c7   :  { %1810 = vrot.lane.b32.xlu1 %v3661_v17, %s4038_s6  ;;  %v2242_v17 = vld [vmem:[#allocation10 + $0x30] sm:$0xff] }
0x2539   :  { %v1811_v11 = vpop.permute.xlu1 %1810 }
0x253a   :  { %v1813_v50 = vmul.f32 %v1811_v11, %v1793_v8  ;;  %v2236_v8 = vld [vmem:[#allocation10] sm:$0xff]  ;;  %v3399_v11 = vpack.c.bf16 %v2242_v17, %v2240_v16  ;;  %v2278_v16 = vld [vmem:[#allocation10 + $0x150] sm:$0xff]  ;;  %v2281_v17 = vld [vmem:[#allocation10 + $0x168] sm:$0xff] }
0x253b   :  { %v3395_v10 = vpack.c.bf16 %v2238_v9, %v2236_v8  ;;  %v2277_v8 = vld [vmem:[#allocation10 + $0x148] sm:$0xff]  ;;  %v2279_v9 = vld [vmem:[#allocation10 + $0x158] sm:$0xff] }
0x253c   :  { %1815 = vrot.lane.b32.xlu0 %v1813_v50, %s4039_s13  ;;  %v2245_v50 = vld [vmem:[#allocation10 + $0x48] sm:$0xff]  ;;  %v3433_v13 = vpack.c.bf16 %v2279_v9, %v2277_v8  ;;  %v2404_v8 = vld [vmem:[%s4882_s9 + $0x98] sm:$0xff] }
0x25ae   :  { %v1816_v19 = vpop.permute.xlu0 %1815 }
0x25af   :  { %3257 = vmatmul.mubr.msk.f32.vlgmr.msra.gmra.mrb[16].mxu1 %vm246_vm1, %v1816_v19  ;;  %v2247_v19 = vld [vmem:[#allocation10 + $0x58] sm:$0xff] }
0x25b0   :  { %3389 = vmatpush3.bf16.msra.mxu1 %v4491_v21  ;;  %3278 = vmatprep.mubr.msk.f32.mxu1 %vm4036_vm0, %v4037_v1 }
0x25b1   :  { %3390 = vmatprep.subr.bf16.mxu1 %v4035_v0 }
0x25b4   :  { %3392 = vmatpush3.bf16.msra.mxu1 %v4494_v24 }
0x25b5   :  { %3394 = vmatprep.subr.bf16.mxu1 %v3393_v4  ;;  %v2272_v4 = vld [vmem:[#allocation10 + $0x120] sm:$0xff] }
0x2682   :  { %v1885_v14 = vpop.f32.mrb[16].mxu1 }
0x2683   :  { %v1890_v22 = vrot.slane %v1885_v14, 6  ;;  %v3258_v23 = vpop.f32.mrb[17].mxu1  ;;  %v3401_v14 = vpack.c.bf16 %v2247_v19, %v2245_v50 }
0x2684   :  { %v2246_v23 = vld [vmem:[#allocation10 + $0x50] sm:$0xff] }
0x2685   :  { %v1892_v25 = vadd.f32 %v1890_v22, %v4520_v37  ;;  %v2244_v22 = vld [vmem:[#allocation10 + $0x40] sm:$0xff] }
0x2687   :  { %v2908_v27 = vmul.f32 -1.442695, %v1892_v25 }
0x2689   :  { %3662 = vpow2.f32 %v2908_v27  ;;  %v2249_v27 = vld [vmem:[#allocation10 + $0x68] sm:$0xff] }
0x268a   :  { %3664 = vtanh.f32 %v1892_v25  ;;  %v3403_v25 = vpack.c.bf16 %v2246_v23, %v2244_v22  ;;  %v2282_v22 = vld [vmem:[#allocation10 + $0x170] sm:$0xff]  ;;  %v2285_v23 = vld [vmem:[#allocation10 + $0x188] sm:$0xff] }
0x2693   :  { %v3663_v30 = vpop.eup %3662 }
0x2694   :  { %v1897_v31 = vadd.f32 1.0, %v3663_v30  ;;  %v3665_v32 = vpop.eup %3664  ;;  %v2251_v30 = vld [vmem:[#allocation10 + $0x78] sm:$0xff] }
0x2696   :  { %3666 = vrcp.f32 %v1897_v31  ;;  %v3405_v31 = vpack.c.bf16 %v2251_v30, %v2249_v27  ;;  %v2140_v27 = vld [vmem:[#allocation8] sm:$0x3] }
0x26a0   :  { %v3667_v21 = vpop.eup %3666 }
0x26a1   :  { %v1900_v33 = vsel %vm4366_vm4, %v3665_v32, %v3667_v21  ;;  %v2248_v32 = vld [vmem:[#allocation10 + $0x60] sm:$0xff]  ;;  %v2250_v21 = vld [vmem:[#allocation10 + $0x70] sm:$0xff] }
0x26a2   :  { %1906 = vrot.lane.b32.xlu1 %v1900_v33, %s4038_s6  ;;  %v1904_v35 = vmul.f32 %v1902_v34, %v1900_v33 }
0x2714   :  { %v1907_v0 = vpop.permute.xlu1 %1906 }
0x2715   :  { %v1909_v24 = vmul.f32 %v1907_v0, %v1900_v33  ;;  %v2253_v0 = vld [vmem:[#allocation10 + $0x88] sm:$0xff] }
0x2717   :  { %1911 = vrot.lane.b32.xlu0 %v1909_v24, %s4039_s13  ;;  %v2255_v24 = vld [vmem:[#allocation10 + $0x98] sm:$0xff] }
0x2718   :  { %v3409_v34 = vpack.c.bf16 %v2255_v24, %v2253_v0  ;;  %v2289_v0 = vld [vmem:[#allocation10 + $0x1a8] sm:$0xff]  ;;  %v2291_v24 = vld [vmem:[#allocation10 + $0x1b8] sm:$0xff] }
0x2789   :  { %v1912_v36 = vpop.permute.xlu0 %1911 }
0x278a   :  { %v1914_v38 = vadd.f32 %v1912_v36, %v1904_v35  ;;  %v2252_v35 = vld [vmem:[#allocation10 + $0x80] sm:$0xff]  ;;  %v2254_v36 = vld [vmem:[#allocation10 + $0x90] sm:$0xff] }
0x278c   :  { %3668 = vtanh.f32 %v1914_v38  ;;  %v2010_v39 = vrot.slane %v1914_v38, 6  ;;  %v3411_v38 = vpack.c.bf16 %v2254_v36, %v2252_v35 }
0x2796   :  { %v3669_v40 = vpop.eup %3668 }
0x2797   :  { %1917 = vrot.lane.b32.xlu1 %v3669_v40, %s4038_s6  ;;  %v2257_v40 = vld [vmem:[#allocation10 + $0xa8] sm:$0xff] }
0x2809   :  { %v1918_v41 = vpop.permute.xlu1 %1917 }
0x280a   :  { %v1920_v42 = vmul.f32 %v1918_v41, %v1900_v33  ;;  %v3407_v33 = vpack.c.bf16 %v2250_v21, %v2248_v32  ;;  %v2259_v41 = vld [vmem:[#allocation10 + $0xb8] sm:$0xff]  ;;  %v2284_v21 = vld [vmem:[#allocation10 + $0x180] sm:$0xff] }
0x280c   :  { %v1922_v43 = vrot.slane %v1920_v42, 2  ;;  %v3413_v42 = vpack.c.bf16 %v2259_v41, %v2257_v40  ;;  %v2288_v40 = vld [vmem:[#allocation10 + $0x1a0] sm:$0xff]  ;;  %v2290_v41 = vld [vmem:[#allocation10 + $0x1b0] sm:$0xff] }
0x280e   :  { %1923 = vrot.lane.b32.xlu0 %v1922_v43, %s4039_s13  ;;  %v2256_v43 = vld [vmem:[#allocation10 + $0xa0] sm:$0xff] }
0x2880   :  { %v1924_v44 = vpop.permute.xlu0 %1923 }
0x2881   :  { %3268 = vmatmul.mubr.msk.f32.vlgmr.msra.gmra.mrb[14].mxu0 %vm246_vm1, %v1924_v44  ;;  %v2258_v44 = vld [vmem:[#allocation10 + $0xb0] sm:$0xff] }
0x2882   :  { %2227 = vmatprep.mubr.f32.mxu0 %v4037_v1  ;;  %2914 = vmatpush1.msk.msra.mxu0 %vm2156_vm8, %v2138_v62  ;;  %v2270_v62 = vld [vmem:[#allocation10 + $0x110] sm:$0xff] }
0x2885   :  { %2915 = vmatmul.mubr.msk.f32.vlgmr.msra.gmra.mrb[16].mxu0 %vm2152_vm9, %v2137_v63  ;;  %v3427_v63 = vpack.c.bf16 %v2270_v62, %v2268_v61 }
0x2954   :  { %v1993_v20 = vpop.f32.mrb[14].mxu0 }
0x2955   :  { %v1998_v45 = vrot.slane %v1993_v20, 4  ;;  %v3269_v46 = vpop.f32.mrb[15].mxu0  ;;  %v3415_v20 = vpack.c.bf16 %v2258_v44, %v2256_v43  ;;  %v2295_v43 = vld [vmem:[#allocation10 + $0x1d8] sm:$0xff] }
0x2956   :  { %v2263_v46 = vld [vmem:[#allocation10 + $0xd8] sm:$0xff] }
0x2957   :  { %v2000_v47 = vadd.f32 %v1998_v45, %v4520_v37  ;;  %v2261_v45 = vld [vmem:[#allocation10 + $0xc8] sm:$0xff] }
0x2959   :  { %v2910_v48 = vmul.f32 -1.442695, %v2000_v47 }
0x295b   :  { %3670 = vpow2.f32 %v2910_v48  ;;  %v3417_v48 = vpack.c.bf16 %v2263_v46, %v2261_v45  ;;  %v2292_v46 = vld [vmem:[#allocation10 + $0x1c0] sm:$0xff] }
0x295c   :  { %3672 = vtanh.f32 %v2000_v47  ;;  %v2260_v47 = vld [vmem:[#allocation10 + $0xc0] sm:$0xff] }
0x2965   :  { %v3671_v49 = vpop.eup %3670 }
0x2966   :  { %v2005_v51 = vadd.f32 1.0, %v3671_v49  ;;  %v3673_v52 = vpop.eup %3672  ;;  %v2262_v49 = vld [vmem:[#allocation10 + $0xd0] sm:$0xff] }
0x2968   :  { %3674 = vrcp.f32 %v2005_v51  ;;  %v2265_v51 = vld [vmem:[#allocation10 + $0xe8] sm:$0xff] }
0x2972   :  { %v3675_v53 = vpop.eup %3674 }
0x2973   :  { %v2008_v54 = vsel %vm4366_vm4, %v3673_v52, %v3675_v53  ;;  %v2267_v52 = vld [vmem:[#allocation10 + $0xf8] sm:$0xff]  ;;  %v3419_v53 = vpack.c.bf16 %v2262_v49, %v2260_v47  ;;  %v2294_v47 = vld [vmem:[#allocation10 + $0x1d0] sm:$0xff] }
0x2974   :  { %2014 = vrot.lane.b32.xlu1 %v2008_v54, %s4038_s6  ;;  %v2012_v57 = vmul.f32 %v2010_v39, %v2008_v54  ;;  %v2269_v39 = vld [vmem:[#allocation10 + $0x108] sm:$0xff]  ;;  %v2299_v49 = vld [vmem:[#allocation10 + $0x1f8] sm:$0xff] }
0x29e6   :  { %v2015_v55 = vpop.permute.xlu1 %2014 }
0x29e7   :  { %v2017_v56 = vmul.f32 %v2015_v55, %v2008_v54  ;;  %v2264_v55 = vld [vmem:[#allocation10 + $0xe0] sm:$0xff] }
0x29e9   :  { %2019 = vrot.lane.b32.xlu0 %v2017_v56, %s4039_s13  ;;  %v2266_v56 = vld [vmem:[#allocation10 + $0xf0] sm:$0xff] }
0x2a5b   :  { %v2020_v58 = vpop.permute.xlu0 %2019 }
0x2a5c   :  { %v4606_v59 = vadd.f32 %v2020_v58, %v2012_v57  ;;  %v2271_v57 = vld [vmem:[#allocation10 + $0x118] sm:$0xff]  ;;  %v3423_v58 = vpack.c.bf16 %v2266_v56, %v2264_v55  ;;  %v2298_v55 = vld [vmem:[#allocation10 + $0x1f0] sm:$0xff] }
0x2a5e   :  { %3676 = vtanh.f32 %v4606_v59 }
0x2a68   :  { %v3677_v60 = vpop.eup %3676 }
0x2a69   :  { %2025 = vrot.lane.b32.xlu1 %v3677_v60, %s4038_s6  ;;  %v3425_v60 = vpack.c.bf16 %v2271_v57, %v2269_v39 }
0x2adb   :  { %v2026_v5 = vpop.permute.xlu1 %2025 }
0x2adc   :  { %v2028_v6 = vmul.f32 %v2026_v5, %v2008_v54  ;;  %v3421_v54 = vpack.c.bf16 %v2267_v52, %v2265_v51  ;;  %v2143_v5 = vshrl.u32 %v226_v26, 7  ;;  %v2280_v26 = vld [vmem:[#allocation10 + $0x160] sm:$0xff]  ;;  %v3451_v52 = vpack.c.bf16 %v2294_v47, %v2292_v46 }
0x2add   :  { %v3439_v30 = vpack.c.bf16 %v2282_v22, %v2280_v26  ;;  %v2407_v26 = vld [vmem:[%s4882_s9 + $0xb0] sm:$0xff]  ;;  %v2408_v22 = vld [vmem:[%s4882_s9 + $0xb8] sm:$0xff] }
0x2ade   :  { %v2030_v7 = vrot.slane %v2028_v6, 4  ;;  %v2229_v6 = vpop.f32.mrb[16].mxu0  ;;  %v4616_v19 = vsub.s32 1, %v2143_v5  ;;  %v4619_v44 = vsub.s32 0, %v2143_v5  ;;  %v2402_v5 = vld [vmem:[%s4882_s9 + $0x88] sm:$0xff] }
0x2ae0   :  { %2031 = vrot.lane.b32.xlu0 %v2030_v7, %s4039_s13  ;;  %v3429_v7 = vpack.c.bf16 %v2275_v3, %v2273_v2  ;;  %v2145_v51 = vrot.slane %v2140_v27, %v4619_v44 }
0x2ae2   :  { %v2230_v56 = vadd.f32 %v2229_v6, %v2145_v51  ;;  %v2385_v6 = vld [vmem:[%s4882_s9] sm:$0xff]  ;;  %v2398_v51 = vld [vmem:[%s4882_s9 + $0x68] sm:$0xff] }
0x2ae4   :  { %v2234_v57 = vmax.f32 %v2230_v56, 0.0 }
0x2b52   :  { %v2032_v18 = vpop.permute.xlu0 %2031 }
0x2b53   :  { %3279 = vmatmul.mubr.msk.f32.vlgmr.msra.gmra.mrb[18].mxu1 %vm246_vm1, %v2032_v18  ;;  %v2274_v18 = vld [vmem:[#allocation10 + $0x130] sm:$0xff] }
0x2b54   :  { %3396 = vmatpush1.bf16.msra.mxu1 %v3395_v10  ;;  %v2231_v10 = vpop.f32.mrb[17].mxu0  ;;  %v3431_v12 = vpack.c.bf16 %v2274_v18, %v2272_v4  ;;  %v2401_v4 = vld [vmem:[%s4882_s9 + $0x80] sm:$0xff]  ;;  %v2403_v18 = vld [vmem:[%s4882_s9 + $0x90] sm:$0xff] }
0x2b55   :  { %3398 = vmatprep.subr.bf16.mxu1 %v3397_v15  ;;  %v2276_v15 = vld [vmem:[#allocation10 + $0x140] sm:$0xff] }
0x2b56   :  { %v3435_v50 = vpack.c.bf16 %v2278_v16, %v2276_v15  ;;  %v2405_v15 = vld [vmem:[%s4882_s9 + $0xa0] sm:$0xff]  ;;  %v2406_v16 = vld [vmem:[%s4882_s9 + $0xa8] sm:$0xff] }
0x2b58   :  { %3400 = vmatpush1.bf16.msra.mxu1 %v3399_v11  ;;  %v2283_v11 = vld [vmem:[#allocation10 + $0x178] sm:$0xff] }
0x2b59   :  { %3402 = vmatprep.subr.bf16.mxu1 %v3401_v14  ;;  %v3437_v14 = vpack.c.bf16 %v2283_v11, %v2281_v17  ;;  %v3465_v11 = vpack.c.bf16 %v2406_v16, %v2405_v15  ;;  %v2495_v15 = vld [vmem:[#allocation14 + $0x8] sm:$0xff] }
0x2b5c   :  { %3404 = vmatpush1.bf16.msra.mxu1 %v3403_v25  ;;  %v2287_v25 = vld [vmem:[#allocation10 + $0x198] sm:$0xff] }
0x2b5d   :  { %3406 = vmatprep.subr.bf16.mxu1 %v3405_v31  ;;  %v2149_v31 = vrot.slane %v2140_v27, %v4616_v19  ;;  %v3441_v32 = vpack.c.bf16 %v2287_v25, %v2285_v23 }
0x2b60   :  { %3408 = vmatpush1.bf16.msra.mxu1 %v3407_v33  ;;  %v2286_v33 = vld [vmem:[#allocation10 + $0x190] sm:$0xff] }
0x2b61   :  { %3410 = vmatprep.subr.bf16.mxu1 %v3409_v34  ;;  %v2232_v34 = vadd.f32 %v2231_v10, %v2149_v31  ;;  %v3443_v35 = vpack.c.bf16 %v2286_v33, %v2284_v21  ;;  %v3461_v10 = vpack.c.bf16 %v2404_v8, %v2403_v18  ;;  %v2391_v31 = vld [vmem:[%s4882_s9 + $0x30] sm:$0xff] }
0x2b63   :  { %v2235_v36 = vmax.f32 %v2232_v34, 0.0 }
0x2b64   :  { %3412 = vmatpush1.bf16.msra.mxu1 %v3411_v38  ;;  %v3445_v38 = vpack.c.bf16 %v2291_v24, %v2289_v0  ;;  %v2409_v0 = vld [vmem:[%s4882_s9 + $0xc0] sm:$0xff]  ;;  %v2410_v24 = vld [vmem:[%s4882_s9 + $0xc8] sm:$0xff] }
0x2b65   :  { %3414 = vmatprep.subr.bf16.mxu1 %v3413_v42  ;;  %v2293_v42 = vld [vmem:[#allocation10 + $0x1c8] sm:$0xff]  ;;  %2376 = vmatprep.mubr.f32.mxu1 %v2235_v36  ;;  %v3473_v34 = vpack.c.bf16 %v2410_v24, %v2409_v0 }
0x2b66   :  { %v3449_v45 = vpack.c.bf16 %v2295_v43, %v2293_v42  ;;  %v2396_v43 = vld [vmem:[%s4882_s9 + $0x58] sm:$0xff]  ;;  %v2498_v24 = vld [vmem:[#allocation14 + $0x20] sm:$0xff] }
0x2b68   :  { %3416 = vmatpush1.bf16.msra.mxu1 %v3415_v20  ;;  %v3447_v20 = vpack.c.bf16 %v2290_v41, %v2288_v40  ;;  %v2412_v40 = vld [vmem:[%s4882_s9 + $0xd8] sm:$0xff]  ;;  %v2395_v41 = vld [vmem:[%s4882_s9 + $0x50] sm:$0xff] }
0x2b69   :  { %3418 = vmatprep.subr.bf16.mxu1 %v3417_v48  ;;  %v2297_v48 = vld [vmem:[#allocation10 + $0x1e8] sm:$0xff]  ;;  %v3479_v46 = vpack.c.bf16 %v2396_v43, %v2395_v41 }
0x2b6a   :  { %v2721_v43 = vld [vmem:[%s4891_s18 + $0x8] sm:$0xff] }
0x2b6c   :  { %3420 = vmatpush1.bf16.msra.mxu1 %v3419_v53  ;;  %v3453_v53 = vpack.c.bf16 %v2299_v49, %v2297_v48  ;;  %v2300_v48 = vld [vmem:[#allocation11] sm:$0x3] }
0x2b6d   :  { %3422 = vmatprep.subr.bf16.mxu1 %v3421_v54  ;;  %v2296_v54 = vld [vmem:[#allocation10 + $0x1e0] sm:$0xff] }
0x2b6e   :  { %v3455_v39 = vpack.c.bf16 %v2298_v55, %v2296_v54  ;;  %v2397_v49 = vld [vmem:[%s4882_s9 + $0x60] sm:$0xff]  ;;  %v2305_v55 = vrot.slane %v2300_v48, %v4619_v44 }
0x2b6f   :  { %v3483_v54 = vpack.c.bf16 %v2398_v51, %v2397_v49  ;;  %v2740_v51 = vld [vmem:[%s4891_s18 + $0xa0] sm:$0xff] }
0x2b70   :  { %3424 = vmatpush1.bf16.msra.mxu1 %v3423_v58 }
0x2b71   :  { %3426 = vmatprep.subr.bf16.mxu1 %v3425_v60 }
0x2b74   :  { %3428 = vmatpush1.bf16.msra.mxu1 %v3427_v63 }
0x2b75   :  { %3430 = vmatprep.subr.bf16.mxu1 %v3429_v7  ;;  %v3457_v7 = vpack.c.bf16 %v2402_v5, %v2401_v4 }
0x2b77   :  { %3458 = vmatprep.subr.bf16.mxu0 %v3457_v7  ;;  %v2118_v7 = vrot.slane %v4606_v59, 6  ;;  %v2504_v59 = vld [vmem:[%s4885_s12 + $0x10] sm:$0xff] }
0x2b78   :  { %3432 = vmatpush1.bf16.msra.mxu1 %v3431_v12  ;;  %v2387_v12 = vld [vmem:[%s4882_s9 + $0x10] sm:$0xff] }
0x2b79   :  { %3434 = vmatprep.subr.bf16.mxu1 %v3433_v13  ;;  %v2388_v13 = vld [vmem:[%s4882_s9 + $0x18] sm:$0xff] }
0x2b7a   :  { %v3463_v17 = vpack.c.bf16 %v2388_v13, %v2387_v12  ;;  %v2502_v13 = vld [vmem:[%s4885_s12] sm:$0xff] }
0x2b7b   :  { %v3491_v16 = vpack.c.bf16 %v2504_v59, %v2502_v13  ;;  %v2748_v13 = vld [vmem:[%s4891_s18 + $0xe0] sm:$0xff]  ;;  %v2749_v59 = vld [vmem:[%s4891_s18 + $0xe8] sm:$0xff] }
0x2b7c   :  { %3436 = vmatpush1.bf16.msra.mxu1 %v3435_v50  ;;  %v2389_v50 = vld [vmem:[%s4882_s9 + $0x20] sm:$0xff] }
0x2b7d   :  { %3438 = vmatprep.subr.bf16.mxu1 %v3437_v14  ;;  %v2390_v14 = vld [vmem:[%s4882_s9 + $0x28] sm:$0xff] }
0x2b7e   :  { %v3467_v25 = vpack.c.bf16 %v2390_v14, %v2389_v50 }
0x2b80   :  { %3440 = vmatpush1.bf16.msra.mxu1 %v3439_v30  ;;  %v3469_v30 = vpack.c.bf16 %v2408_v22, %v2407_v26  ;;  %v2494_v26 = vld [vmem:[#allocation14] sm:$0xff]  ;;  %v2496_v22 = vld [vmem:[#allocation14 + $0x10] sm:$0xff] }
0x2b81   :  { %3442 = vmatprep.subr.bf16.mxu1 %v3441_v32  ;;  %v2392_v32 = vld [vmem:[%s4882_s9 + $0x38] sm:$0xff] }
0x2b82   :  { %v3471_v33 = vpack.c.bf16 %v2392_v32, %v2391_v31  ;;  %v3495_v32 = vpack.c.bf16 %v2496_v22, %v2494_v26  ;;  %v2734_v22 = vld [vmem:[%s4891_s18 + $0x70] sm:$0xff] }
0x2b84   :  { %3444 = vmatpush1.bf16.msra.mxu1 %v3443_v35  ;;  %v2394_v35 = vld [vmem:[%s4882_s9 + $0x48] sm:$0xff] }
0x2b85   :  { %3446 = vmatprep.subr.bf16.mxu1 %v3445_v38  ;;  %v3475_v36 = vpack.c.bf16 %v2394_v35, %v2393_v29  ;;  %v2411_v38 = vld [vmem:[%s4882_s9 + $0xd0] sm:$0xff]  ;;  %v2736_v35 = vld [vmem:[%s4891_s18 + $0x80] sm:$0xff] }
0x2b86   :  { %v3477_v42 = vpack.c.bf16 %v2412_v40, %v2411_v38 }
0x2b88   :  { %3448 = vmatpush1.bf16.msra.mxu1 %v3447_v20  ;;  %v2413_v20 = vld [vmem:[%s4882_s9 + $0xe0] sm:$0xff] }
0x2b89   :  { %3450 = vmatprep.subr.bf16.mxu1 %v3449_v45  ;;  %v2414_v45 = vld [vmem:[%s4882_s9 + $0xe8] sm:$0xff] }
0x2b8a   :  { %v3481_v47 = vpack.c.bf16 %v2414_v45, %v2413_v20  ;;  %v2738_v20 = vld [vmem:[%s4891_s18 + $0x90] sm:$0xff]  ;;  %v2739_v45 = vld [vmem:[%s4891_s18 + $0x98] sm:$0xff] }
0x2b8c   :  { %3452 = vmatpush1.bf16.msra.mxu1 %v3451_v52  ;;  %v2415_v52 = vld [vmem:[%s4882_s9 + $0xf0] sm:$0xff] }
0x2b8d   :  { %3454 = vmatprep.subr.bf16.mxu1 %v3453_v53  ;;  %v2416_v53 = vld [vmem:[%s4882_s9 + $0xf8] sm:$0xff] }
0x2b8e   :  { %v3485_v56 = vpack.c.bf16 %v2416_v53, %v2415_v52  ;;  %v2741_v52 = vld [vmem:[%s4891_s18 + $0xa8] sm:$0xff] }
0x2b90   :  { %3456 = vmatpush1.bf16.msra.mxu1 %v3455_v39  ;;  %v2309_v39 = vrot.slane %v2300_v48, %v4616_v19  ;;  %v2723_v48 = vld [vmem:[%s4891_s18 + $0x18] sm:$0xff] }
0x2b93   :  { %2377 = vmatmul.mubr.f32.vlgmr.msra.gmra.mrb[20].mxu1 %v2234_v57 }
0x2c26   :  { %v2101_v58 = vpop.f32.mrb[18].mxu1 }
0x2c27   :  { %v2106_v60 = vrot.slane %v2101_v58, 2  ;;  %v3280_v61 = vpop.f32.mrb[19].mxu1 }
0x2c29   :  { %v2108_v62 = vadd.f32 %v2106_v60, %v4520_v37  ;;  %v2386_v37 = vld [vmem:[%s4882_s9 + $0x8] sm:$0xff] }
0x2c2a   :  { %v3459_v9 = vpack.c.bf16 %v2386_v37, %v2385_v6 }
0x2c2b   :  { %v2912_v63 = vmul.f32 -1.442695, %v2108_v62 }
0x2c2c   :  { %3460 = vmatpush3.bf16.msra.mxu0 %v3459_v9  ;;  %v2503_v9 = vld [vmem:[%s4885_s12 + $0x8] sm:$0xff] }
0x2c2d   :  { %3678 = vpow2.f32 %v2912_v63  ;;  %3462 = vmatprep.subr.bf16.mxu0 %v3461_v10  ;;  %v2399_v63 = vld [vmem:[%s4882_s9 + $0x70] sm:$0xff]  ;;  %v2505_v10 = vld [vmem:[%s4885_s12 + $0x18] sm:$0xff] }
0x2c2e   :  { %3680 = vtanh.f32 %v2108_v62  ;;  %v3489_v12 = vpack.c.bf16 %v2505_v10, %v2503_v9  ;;  %v2730_v9 = vld [vmem:[%s4891_s18 + $0x50] sm:$0xff]  ;;  %v2731_v10 = vld [vmem:[%s4891_s18 + $0x58] sm:$0xff] }
0x2c30   :  { %3464 = vmatpush3.bf16.msra.mxu0 %v3463_v17  ;;  %v2497_v17 = vld [vmem:[#allocation14 + $0x18] sm:$0xff] }
0x2c31   :  { %3466 = vmatprep.subr.bf16.mxu0 %v3465_v11  ;;  %v3493_v11 = vpack.c.bf16 %v2497_v17, %v2495_v15  ;;  %v2732_v15 = vld [vmem:[%s4891_s18 + $0x60] sm:$0xff]  ;;  %v3525_v17 = vpack.c.bf16 %v2749_v59, %v2748_v13 }
0x2c34   :  { %3468 = vmatpush3.bf16.msra.mxu0 %v3467_v25 }
0x2c35   :  { %3470 = vmatprep.subr.bf16.mxu0 %v3469_v30  ;;  %v2501_v30 = vld [vmem:[#allocation14 + $0x38] sm:$0xff] }
0x2c37   :  { %v3679_v2 = vpop.eup %3678 }
0x2c38   :  { %v2113_v3 = vadd.f32 1.0, %v3679_v2  ;;  %v3681_v23 = vpop.eup %3680  ;;  %3472 = vmatpush3.bf16.msra.mxu0 %v3471_v33  ;;  %v2400_v2 = vld [vmem:[%s4882_s9 + $0x78] sm:$0xff] }
0x2c39   :  { %3474 = vmatprep.subr.bf16.mxu0 %v3473_v34  ;;  %v3487_v4 = vpack.c.bf16 %v2400_v2, %v2399_v63  ;;  %v2500_v34 = vld [vmem:[#allocation14 + $0x30] sm:$0xff]  ;;  %v2744_v63 = vld [vmem:[%s4891_s18 + $0xc0] sm:$0xff]  ;;  %v2745_v2 = vld [vmem:[%s4891_s18 + $0xc8] sm:$0xff] }
0x2c3a   :  { %3682 = vrcp.f32 %v2113_v3  ;;  %v3499_v29 = vpack.c.bf16 %v2500_v34, %v2498_v24  ;;  %v2677_v24 = vld [vmem:[#allocation20] sm:$0x3] }
0x2c3c   :  { %3476 = vmatpush3.bf16.msra.mxu0 %v3475_v36  ;;  %v2737_v36 = vld [vmem:[%s4891_s18 + $0x88] sm:$0xff] }
0x2c3d   :  { %3478 = vmatprep.subr.bf16.mxu0 %v3477_v42  ;;  %v3501_v38 = vpack.c.bf16 %v2737_v36, %v2736_v35 }
0x2c40   :  { %3480 = vmatpush3.bf16.msra.mxu0 %v3479_v46  ;;  %v3505_v46 = vpack.c.bf16 %v2739_v45, %v2738_v20  ;;  %v2706_v20 = vld [vmem:[#allocation19] sm:$0x3] }
0x2c41   :  { %3482 = vmatprep.subr.bf16.mxu0 %v3481_v47  ;;  %v2722_v47 = vld [vmem:[%s4891_s18 + $0x10] sm:$0xff] }
0x2c42   :  { %v3507_v53 = vpack.c.bf16 %v2723_v48, %v2722_v47  ;;  %v2715_v48 = vrot.slane %v2706_v20, %v4616_v19 }
0x2c44   :  { %v3683_v27 = vpop.eup %3682  ;;  %3484 = vmatpush3.bf16.msra.mxu0 %v3483_v54  ;;  %v3509_v54 = vpack.c.bf16 %v2741_v52, %v2740_v51  ;;  %v2711_v51 = vrot.slane %v2706_v20, %v4619_v44 }
0x2c45   :  { %v4673_v21 = vsel %vm4366_vm4, %v3681_v23, %v3683_v27  ;;  %3486 = vmatprep.subr.bf16.mxu0 %v3485_v56  ;;  %v2916_v23 = vld [vmem:[#allocation13] ss:$0 sm:$0xff]  ;;  %v2499_v27 = vld [vmem:[#allocation14 + $0x28] sm:$0xff] }
0x2c46   :  { %2122 = vrot.lane.b32.xlu1 %v4673_v21, %s4038_s6  ;;  %v2120_v37 = vmul.f32 %v2118_v7, %v4673_v21  ;;  %v3497_v0 = vpack.c.bf16 %v2501_v30, %v2499_v27  ;;  %v2725_v56 = vld [vmem:[%s4891_s18 + $0x28] sm:$0xff] }
0x2c47   :  { %v2674_v27 = vld [vmem:[#allocation22] sm:$0x3] }
0x2c48   :  { %3488 = vmatpush3.bf16.msra.mxu0 %v3487_v4  ;;  %v3517_v4 = vpack.c.bf16 %v2745_v2, %v2744_v63  ;;  %v2675_v30 = vadd.f32 1e-05, %v2674_v27 }
0x2c49   :  { %3490 = vmatprep.subr.bf16.mxu0 %v3489_v12  ;;  %v3523_v12 = vpack.c.bf16 %v2731_v10, %v2730_v9 }
0x2c66   :  { %v2378_v58 = vpop.f32.mrb[20].mxu1 }
0x2c67   :  { %v2379_v61 = vadd.f32 %v2378_v58, %v2305_v55  ;;  %v2380_v62 = vpop.f32.mrb[21].mxu1  ;;  %v2724_v55 = vld [vmem:[%s4891_s18 + $0x20] sm:$0xff] }
0x2c68   :  { %v2381_v3 = vadd.f32 %v2380_v62, %v2309_v39  ;;  %v2742_v39 = vld [vmem:[%s4891_s18 + $0xb0] sm:$0xff]  ;;  %v3511_v58 = vpack.c.bf16 %v2725_v56, %v2724_v55  ;;  %v2727_v62 = vld [vmem:[%s4891_s18 + $0x38] sm:$0xff]  ;;  %v2919_v56 = vld [vmem:[%s4892_s19] ss:$0 sm:$0xff]  ;;  %s4040_s19 = smov [#allocation23]  }
0x2c69   :  { %v2383_v5 = vmax.f32 %v2379_v61, 0.0  ;;  %v2726_v61 = vld [vmem:[%s4891_s18 + $0x30] sm:$0xff]  ;;  %s2857_s22 = sshll.u32 %s4040_s19, 4  ;;  %s2858_s22 = int_to_ptr.vmem [resolvable:$true] %s2857_s22 }
0x2c6a   :  { %v2384_v6 = vmax.f32 %v2381_v3, 0.0  ;;  %v3515_v3 = vpack.c.bf16 %v2727_v62, %v2726_v61  ;;  %s3980_s29 = scalar_lea.vmem %s2858_s22, 32  ;;  %p3985_p7 = scmp.lt.s32.totalorder %s2858_s22, %s2858_s22 }
0x2c6b   :  { %p3981_p6 = scmp.ne.s32.totalorder %s2858_s22, %s3980_s29  ;;  %p3986_p8 = scmp.lt.s32.totalorder %s3980_s29, %s3980_s29 }
0x2c6c   :  { %2488 = vmatprep.mubr.f32.mxu0 %v2384_v6  ;;  %v2729_v6 = vld [vmem:[%s4891_s18 + $0x48] sm:$0xff] }
0x2c6d   :  { %2489 = vmatmul.mubr.f32.vlgmr.msra.gmra.mrb[18].mxu0 %v2383_v5  ;;  %v2728_v5 = vld [vmem:[%s4891_s18 + $0x40] sm:$0xff]  ;;  %p3987_p9 = por %p3986_p8, %p3985_p7 }
0x2c6e   :  { %2574 = vmatprep.mubr.f32.mxu0 %v4037_v1  ;;  %3492 = vmatpush1.bf16.msra.mxu0 %v3491_v16  ;;  %v3519_v7 = vpack.c.bf16 %v2729_v6, %v2728_v5  ;;  %v2733_v16 = vld [vmem:[%s4891_s18 + $0x68] sm:$0xff] }
0x2c6f   :  { %3494 = vmatprep.subr.bf16.mxu0 %v3493_v11  ;;  %v3527_v11 = vpack.c.bf16 %v2733_v16, %v2732_v15  ;;  %p3988_p10 = pnand %p3987_p9, %p3981_p6 }
0x2cb8   :  { %v2123_v57 = vpop.permute.xlu1 %2122 }
0x2cb9   :  { %v2125_v60 = vmul.f32 %v2123_v57, %v4673_v21  ;;  %v2743_v57 = vld [vmem:[%s4891_s18 + $0xb8] sm:$0xff] }
0x2cbb   :  { %2127 = vrot.lane.b32.xlu0 %v2125_v60, %s4039_s13  ;;  %v3513_v60 = vpack.c.bf16 %v2743_v57, %v2742_v39 }
0x2d2d   :  { %v2128_v18 = vpop.permute.xlu0 %2127 }
0x2d2e   :  { %v2130_v8 = vadd.f32 %v2128_v18, %v2120_v37  ;;  %v2746_v37 = vld [vmem:[%s4891_s18 + $0xd0] sm:$0xff]  ;;  %v2747_v18 = vld [vmem:[%s4891_s18 + $0xd8] sm:$0xff] }
0x2d30   :  { %3684 = vtanh.f32 %v2130_v8  ;;  %v3521_v8 = vpack.c.bf16 %v2747_v18, %v2746_v37 }
0x2d31   :  { %3686 = vrsqrt.f32 %v2675_v30 }
0x2d3a   :  { %v3685_v50 = vpop.eup %3684 }
0x2d3b   :  { %2133 = vrot.lane.b32.xlu1 %v3685_v50, %s4038_s6  ;;  %v2750_v50 = vld [vmem:[%s4891_s18 + $0xf0] sm:$0xff] }
0x2d40   :  { %v3045_v14 = vpop.f32.mrb[18].mxu0 }
0x2d41   :  { %v3046_v25 = vpop.f32.mrb[19].mxu0 }
0x2d42   :  { %v3047_v31 = vadd.f32 %v3046_v25, %v3045_v14  ;;  %v2751_v14 = vld [vmem:[%s4891_s18 + $0xf8] sm:$0xff] }
0x2d43   :  { %v3529_v26 = vpack.c.bf16 %v2751_v14, %v2750_v50 }
0x2d44   :  { %v2491_v33 = vadd.f32 %v3047_v31, %v2916_v23  ;;  %v2735_v23 = vld [vmem:[%s4891_s18 + $0x78] sm:$0xff]  ;;  %v2658_v31 = vld [vmem:[#allocation16] sm:$0x3] }
0x2d45   :  { %v3531_v25 = vpack.c.bf16 %v2735_v23, %v2734_v22  ;;  %v2667_v34 = vrot.slane %v2658_v31, %v4616_v19 }
0x2d46   :  { %2917 = vmatmul.mubr.msk.f32.vlgmr.msra.gmra.mrb[20].mxu0 %vm2506_vm10, %v2491_v33  ;;  %v2691_v33 = vld [vmem:[#allocation17] sm:$0x3] }
0x2d47   :  { %3496 = vmatpush1.bf16.msra.mxu0 %v3495_v32  ;;  %2651 = vmatprep.mubr.f32.mxu0 %v4037_v1  ;;  %v2720_v1 = vld [vmem:[%s4891_s18] sm:$0xff]  ;;  %v3687_v32 = vpop.eup %3686 }
0x2d48   :  { %3498 = vmatprep.subr.bf16.mxu0 %v3497_v0  ;;  %v2663_v0 = vrot.slane %v2658_v31, %v4619_v44 }
0x2d4b   :  { %3500 = vmatpush1.bf16.msra.mxu0 %v3499_v29  ;;  %v2692_v29 = vmul.f32 %v3687_v32, %v2691_v33 }
0x2d4c   :  { %3502 = vmatprep.subr.bf16.mxu0 %v3501_v38  ;;  %v2682_v38 = vrot.slane %v2677_v24, %v4619_v44 }
0x2dad   :  { %v2134_v40 = vpop.permute.xlu1 %2133 }
0x2dae   :  { %v2136_v41 = vmul.f32 %v2134_v40, %v4673_v21  ;;  %v3503_v21 = vpack.c.bf16 %v2721_v43, %v2720_v1  ;;  %v2697_v43 = vrot.slane %v2692_v29, %v4619_v44 }
0x2db0   :  { %v2582_v42 = vrot.slane %v2136_v41, 6 }
0x2db2   :  { %2583 = vrot.lane.b32.xlu0 %v2582_v42, %s4039_s13  ;;  %v2686_v42 = vrot.slane %v2677_v24, %v4616_v19 }
0x2e24   :  { %v2584_v49 = vpop.permute.xlu0 %2583 }
0x2e25   :  { %2918 = vmatmul.mubr.msk.f32.vlgmr.msra.gmra.mrb[20].mxu0 %vm246_vm1, %v2584_v49 }
0x2e26   :  { %3504 = vmatpush3.bf16.msra.mxu0 %v3503_v21  ;;  %v2701_v21 = vrot.slane %v2692_v29, %v4616_v19 }
0x2e27   :  { %3506 = vmatprep.subr.bf16.mxu0 %v3505_v46 }
0x2e2a   :  { %3508 = vmatpush3.bf16.msra.mxu0 %v3507_v53 }
0x2e2b   :  { %3510 = vmatprep.subr.bf16.mxu0 %v3509_v54 }
0x2e2e   :  { %3512 = vmatpush3.bf16.msra.mxu0 %v3511_v58 }
0x2e2f   :  { %3514 = vmatprep.subr.bf16.mxu0 %v3513_v60 }
0x2e32   :  { %3516 = vmatpush3.bf16.msra.mxu0 %v3515_v3 }
0x2e33   :  { %3518 = vmatprep.subr.bf16.mxu0 %v3517_v4 }
0x2e36   :  { %3520 = vmatpush3.bf16.msra.mxu0 %v3519_v7 }
0x2e37   :  { %3522 = vmatprep.subr.bf16.mxu0 %v3521_v8 }
0x2e3a   :  { %3524 = vmatpush3.bf16.msra.mxu0 %v3523_v12 }
0x2e3b   :  { %3526 = vmatprep.subr.bf16.mxu0 %v3525_v17 }
0x2e3e   :  { %3528 = vmatpush3.bf16.msra.mxu0 %v3527_v11 }
0x2e3f   :  { %3530 = vmatprep.subr.bf16.mxu0 %v3529_v26 }
0x2e42   :  { %3532 = vmatpush3.bf16.msra.mxu0 %v3531_v25 }
0x2ef8   :  { %v2653_v35 = vpop.f32.mrb[20].mxu0 }
0x2ef9   :  { %v2670_v36 = vadd.f32 %v2663_v0, %v2653_v35  ;;  %v2655_v40 = vpop.f32.mrb[21].mxu0 }
0x2efa   :  { %v2671_v41 = vadd.f32 %v2667_v34, %v2655_v40 }
0x2efb   :  { %v2672_v1 = vmax.f32 %v2670_v36, 0.0 }
0x2efc   :  { %v2673_v45 = vmax.f32 %v2671_v41, 0.0 }
0x2efd   :  { %v2689_v46 = vsub.f32 %v2672_v1, %v2682_v38 }
0x2efe   :  { %v2690_v47 = vsub.f32 %v2673_v45, %v2686_v42 }
0x2eff   :  { %v2704_v49 = vmul.f32 %v2697_v43, %v2689_v46 }
0x2f00   :  { %v2705_v52 = vmul.f32 %v2701_v21, %v2690_v47 }
0x2f01   :  { %v2718_v54 = vadd.f32 %v2711_v51, %v2704_v49 }
0x2f02   :  { %v2719_v53 = vadd.f32 %v2715_v48, %v2705_v52 }
0x2f04   :  { %2823 = vmatprep.mubr.f32.mxu0 %v2719_v53 }
0x2f05   :  { %2824 = vmatmul.mubr.f32.vlgmr.msra.gmra.mrb[22].mxu0 %v2718_v54 }
0x2fd8   :  { %v3080_v55 = vpop.f32.mrb[22].mxu0 }
0x2fd9   :  { %v3081_v39 = vpop.f32.mrb[23].mxu0 }
0x2fda   :  { %v3082_v57 = vadd.f32 %v3081_v39, %v3080_v55 }
0x2fdc   :  { %v2826_v58 = vadd.f32 %v3082_v57, %v2919_v56 }
0x2fde   :  { %v2920_v60 = vmul.f32 -1.442695, %v2826_v58 }
0x2fe0   :  { %3688 = vpow2.f32 %v2920_v60 }
0x2fea   :  { %v3689_v61 = vpop.eup %3688 }
0x2feb   :  { %v2832_v19 = vadd.f32 1.0, %v3689_v61 }
0x2fed   :  { %3690 = vrcp.f32 %v2832_v19 }
0x2ff7   :  { %v3691_v44 = vpop.eup %3690 }
0x2ff8   :  { %v2843_v62 = vsel %vm2838_vm13, %v3691_v44, 0.0  ;;  %v2839_v63 = vsel %vm2835_vm14, %v3691_v44, 0.0 }
0x2ff9   :  { %v2844_v2 = vsel %vm1178_vm5, %v2843_v62, 0.0  ;;  %v2840_v3 = vsel %vm1178_vm5, %v2839_v63, 0.0 }
0x2ffa   :  { %2845 = vadd.xlane.f32.xlu0 %v2844_v2  ;;  %2841 = vadd.xlane.f32.xlu1 %v2840_v3 }
0x3087   :  { %v2846_v4 = vpop.xlane.xlu0 %2845  ;;  %v2842_v5 = vpop.xlane.xlu1 %2841 }
0x3088   :  { %v2847_v6 = vsel %vm2835_vm14, %v2842_v5, %v2846_v4 }
0x3089   :  { %3692 = vrcp.f32 %v2847_v6 }
0x3093   :  { %v3693_v7 = vpop.eup %3692 }
0x3094   :  { %v2849_v37 = vmul.f32 %v3693_v7, %v3691_v44 }
0x3096   :  { %2850 = vst [vmem:[#allocation23] sm:$0x3] %v2849_v37 }
0x3097   :  { %3991 = shalt.err (!%p3988_p10)
}
0x3098   :  { %s3992_s13 = scalar_lea.hbm %s4893_s20, 32 }
0x3099   :  { %p3993_p11 = scmp.ne.s32.totalorder %s4893_s20, %s3992_s13  ;;  %p3996_p12 = scmp.lt.u32.totalorder %s3992_s13, %s4893_s20 }
0x309b   :  { %p3998_p13 = pnand %p3996_p12, %p3993_p11 }
0x309d   :  { %4001 = shalt.err (!%p3998_p13)
}
0x309e   :  { %2860 = dma.vmem_to_hbm [thread:$0]  %s2858_s22, 32, %s4893_s20, [#allocation4]  }
0x309f   :  { %4016 = dma.done.wait [#allocation4], 32  }
0x30a0   :  { %4017 = vsyncadd [#allocation4], 4294967264 }
0x30a1   :  { %2864 = vsyncpa [#allocation3], 1 }
0x30a2   :  { %2865 = vsyncpa [#allocation6], 1 }
0x30a3   :  { %2866 = vsyncpa [#allocation9], 1 }
0x30a4   :  { %2867 = vsyncpa [#allocation12], 1 }
0x30a5   :  { %2868 = vsyncpa [#allocation15], 1 }
0x30a6   :  { %2869 = vsyncpa [#allocation18], 1 }
0x30a7   :  { %2870 = vsyncpa [#allocation21], 1 }
0x30a8   :  { %2871 = vsyncpa [#allocation4], 1 }

</bundles_post_ra>
